<compile_context>
chip_gen: v6e
topology: v6e:2x2x1
jax: 0.10.0
libtpu: 0.0.40
codegen_flags: <defaults>
</compile_context>

<pallas_src>
import functools

import jax
import jax.numpy as jnp
from jax.experimental import pallas as pl
from jax.experimental.pallas import tpu as pltpu


# ---------------------------------------------------------------------------
# Kernel: one grid step == one batch element
# ---------------------------------------------------------------------------
def _block_kernel(p_ref, w_ref, bconv_ref, gamma_ref, beta_ref, proj_ref,
                  scale_ref, shift_ref, o_ref, *,
                  n_tokens, chans_per_group, eps_w, eps_gn):
    """
    p_ref     : (1, N, 9*Cin)   im2col patches for this batch element
    w_ref     : (9*Cin, Cout)   RAW conv weight (reordered); standardized here
    bconv_ref : (1, Cout)       conv bias
    gamma_ref : (1, Cout)       GroupNorm weight
    beta_ref  : (1, Cout)       GroupNorm bias
    proj_ref  : (Cout, Cout)    group-membership projector (1 if same group)
    scale_ref : (1, 1, Cout)    FiLM scale for this batch element (0 if unused)
    shift_ref : (1, 1, Cout)    FiLM shift for this batch element (0 if unused)
    o_ref     : (1, N, Cout)    output tokens
    """
    # ---- weight standardization (per output channel == per column) ----
    w = w_ref[...].astype(jnp.float32)                        # (9*Cin, Cout)
    w_mean = jnp.mean(w, axis=0, keepdims=True)
    w_ctr = w - w_mean
    w_var = jnp.mean(w_ctr * w_ctr, axis=0, keepdims=True)    # biased var
    w_std = w_ctr * jax.lax.rsqrt(w_var + eps_w)

    # ---- 3x3 conv as a single im2col matmul (+ bias), f32 accumulation ----
    x = p_ref[0].astype(jnp.float32)                          # (N, 9*Cin)
    h = jnp.dot(x, w_std, preferred_element_type=jnp.float32)
    h = h + bconv_ref[...].astype(jnp.float32)                # (N, Cout)

    # ---- GroupNorm via group projector (no transposes / lane reshapes) ----
    inv_cnt = 1.0 / float(n_tokens * chans_per_group)
    proj = proj_ref[...].astype(jnp.float32)                  # (Cout, Cout)
    mean_c = jnp.sum(jnp.dot(h, proj, preferred_element_type=jnp.float32),
                     axis=0, keepdims=True) * inv_cnt         # (1, Cout)
    d = h - mean_c
    var_c = jnp.sum(jnp.dot(d * d, proj, preferred_element_type=jnp.float32),
                    axis=0, keepdims=True) * inv_cnt          # (1, Cout)
    inv_c = jax.lax.rsqrt(var_c + eps_gn)                     # EUP rsqrt

    y = d * inv_c * gamma_ref[...].astype(jnp.float32) \
        + beta_ref[...].astype(jnp.float32)

    # ---- optional FiLM scale/shift (identity when scale = shift = 0) ----
    y = y * (scale_ref[0].astype(jnp.float32) + 1.0) \
        + shift_ref[0].astype(jnp.float32)

    # ---- SiLU ----
    y = y * jax.nn.sigmoid(y)

    o_ref[0] = y.astype(o_ref.dtype)


# ---------------------------------------------------------------------------
# Wrapper
# ---------------------------------------------------------------------------
def block_pallas(x, w_conv, b_conv, gamma, beta, scale_shift=None, *, groups=8):
    """x: (B, Cin, H, W). w_conv: (Cout, Cin, 3, 3). b_conv/gamma/beta: (Cout,).
    scale_shift: optional (scale, shift) each (B, Cout, 1, 1)."""
    B, Cin, H, W = x.shape
    Cout = w_conv.shape[0]
    assert Cout % groups == 0
    Cg = Cout // groups
    N = H * W
    K9 = 9 * Cin

    # NCHW -> NHWC, zero-pad spatially by 1 (padding=1 of the 3x3 conv).
    x_nhwc = jnp.transpose(x, (0, 2, 3, 1))
    x_pad = jnp.pad(x_nhwc, ((0, 0), (1, 1), (1, 1), (0, 0)))

    # im2col: (B, N, 9*Cin), tap-major / channel-minor in the last dim.
    taps = []
    for ky in range(3):
        for kx in range(3):
            taps.append(x_pad[:, ky:ky + H, kx:kx + W, :])     # (B, H, W, Cin)
    patches = jnp.stack(taps, axis=3).reshape(B, N, K9)

    # Conv weight (Cout, Cin, 3, 3) -> (9*Cin, Cout) with the SAME tap ordering.
    w_mat = jnp.transpose(w_conv, (2, 3, 1, 0)).reshape(K9, Cout)

    # Group-membership projector: P[c, c'] = 1 iff c and c' share a group.
    gidx = jnp.arange(Cout) // Cg
    proj = (gidx[:, None] == gidx[None, :]).astype(x.dtype)    # (Cout, Cout)

    if scale_shift is None:
        scale = jnp.zeros((B, Cout), x.dtype)
        shift = jnp.zeros((B, Cout), x.dtype)
    else:
        scale, shift = scale_shift
        scale = scale.reshape(B, Cout).astype(x.dtype)
        shift = shift.reshape(B, Cout).astype(x.dtype)
    scale3 = scale.reshape(B, 1, Cout)
    shift3 = shift.reshape(B, 1, Cout)

    kernel = functools.partial(_block_kernel, n_tokens=N, chans_per_group=Cg,
                               eps_w=1e-5, eps_gn=1e-5)

    out_tok = pl.pallas_call(
        kernel,
        out_shape=jax.ShapeDtypeStruct((B, N, Cout), x.dtype),
        grid=(B,),
        in_specs=[
            pl.BlockSpec((1, N, K9), lambda b: (b, 0, 0)),      # patches
            pl.BlockSpec((K9, Cout), lambda b: (0, 0)),         # conv weight
            pl.BlockSpec((1, Cout), lambda b: (0, 0)),          # conv bias
            pl.BlockSpec((1, Cout), lambda b: (0, 0)),          # gamma
            pl.BlockSpec((1, Cout), lambda b: (0, 0)),          # beta
            pl.BlockSpec((Cout, Cout), lambda b: (0, 0)),       # group projector
            pl.BlockSpec((1, 1, Cout), lambda b: (b, 0, 0)),    # scale
            pl.BlockSpec((1, 1, Cout), lambda b: (b, 0, 0)),    # shift
        ],
        out_specs=pl.BlockSpec((1, N, Cout), lambda b: (b, 0, 0)),
        compiler_params=pltpu.CompilerParams(
            dimension_semantics=("parallel",)),
    )(patches, w_mat, b_conv.reshape(1, Cout), gamma.reshape(1, Cout),
      beta.reshape(1, Cout), proj, scale3, shift3)

    # (B, N, Cout) -> NCHW
    return jnp.transpose(out_tok.reshape(B, H, W, Cout), (0, 3, 1, 2))


# ---------------------------------------------------------------------------
# Pure-JAX reference (mirrors the PyTorch forward exactly)
# ---------------------------------------------------------------------------
def block_ref(x, w_conv, b_conv, gamma, beta, scale, shift, *, groups,
              use_scale_shift):
    eps_w = 1e-5                       # f32 branch of WeightStandardizedConv2d
    mean = jnp.mean(w_conv, axis=(1, 2, 3), keepdims=True)
    var = jnp.var(w_conv, axis=(1, 2, 3), keepdims=True)       # unbiased=False
    w_n = (w_conv - mean) * jax.lax.rsqrt(var + eps_w)

    y = jax.lax.conv_general_dilated(
        x, w_n, window_strides=(1, 1), padding=((1, 1), (1, 1)),
        dimension_numbers=('NCHW', 'OIHW', 'NCHW'),
        precision=jax.lax.Precision.HIGHEST)
    y = y + b_conv[None, :, None, None]

    B, C, H, W = y.shape
    Cg = C // groups
    yg = y.reshape(B, groups, Cg, H, W)
    m = jnp.mean(yg, axis=(2, 3, 4), keepdims=True)
    v = jnp.var(yg, axis=(2, 3, 4), keepdims=True)
    yn = (yg - m) * jax.lax.rsqrt(v + 1e-5)
    yn = yn.reshape(B, C, H, W) * gamma[None, :, None, None] \
        + beta[None, :, None, None]

    if use_scale_shift:
        yn = yn * (scale.reshape(B, C, 1, 1) + 1.0) + shift.reshape(B, C, 1, 1)
    return yn * jax.nn.sigmoid(yn)


# ---------------------------------------------------------------------------
if __name__ == "__main__":
    B, DIM, DIM_OUT, H, W, GROUPS = 2, 4, 32, 16, 16, 8

    key = jax.random.PRNGKey(0)
    k = jax.random.split(key, 7)
    x = jax.random.normal(k[0], (B, DIM, H, W), dtype=jnp.float32)
    w_conv = jax.random.normal(k[1], (DIM_OUT, DIM, 3, 3), dtype=jnp.float32) * 0.2
    b_conv = jax.random.normal(k[2], (DIM_OUT,), dtype=jnp.float32) * 0.1
    gamma = 1.0 + 0.1 * jax.random.normal(k[3], (DIM_OUT,), dtype=jnp.float32)
    beta = 0.1 * jax.random.normal(k[4], (DIM_OUT,), dtype=jnp.float32)
    scale = 0.1 * jax.random.normal(k[5], (B, DIM_OUT, 1, 1), dtype=jnp.float32)
    shift = 0.1 * jax.random.normal(k[6], (B, DIM_OUT, 1, 1), dtype=jnp.float32)

    # With scale_shift
    out = block_pallas(x, w_conv, b_conv, gamma, beta,
                       scale_shift=(scale, shift), groups=GROUPS)
    out = jax.block_until_ready(out)
    ref = block_ref(x, w_conv, b_conv, gamma, beta, scale, shift,
                    groups=GROUPS, use_scale_shift=True)
    assert out.shape == (B, DIM_OUT, H, W)
    err = float(jnp.max(jnp.abs(out - ref)))
    assert err < 5e-4, f"max abs err (with scale_shift) = {err}"

    # Without scale_shift (identity path)
    out2 = jax.block_until_ready(
        block_pallas(x, w_conv, b_conv, gamma, beta, scale_shift=None,
                     groups=GROUPS))
    ref2 = block_ref(x, w_conv, b_conv, gamma, beta, None, None,
                     groups=GROUPS, use_scale_shift=False)
    err2 = float(jnp.max(jnp.abs(out2 - ref2)))
    assert err2 < 5e-4, f"max abs err (no scale_shift) = {err2}"

    print("KERNEL_OK")
</pallas_src>

<mosaic_0001>
module attributes {stable_mosaic.version = 11 : i64} {
  func.func @_block_kernel(%arg0: i32, %arg1: memref<1x256x36xf32, #tpu.memory_space<vmem>>, %arg2: memref<36x32xf32, #tpu.memory_space<vmem>>, %arg3: memref<1x32xf32, #tpu.memory_space<vmem>>, %arg4: memref<1x32xf32, #tpu.memory_space<vmem>>, %arg5: memref<1x32xf32, #tpu.memory_space<vmem>>, %arg6: memref<32x32xf32, #tpu.memory_space<vmem>>, %arg7: memref<1x1x32xf32, #tpu.memory_space<vmem>>, %arg8: memref<1x1x32xf32, #tpu.memory_space<vmem>>, %arg9: memref<1x256x32xf32, #tpu.memory_space<vmem>>) attributes {dimension_semantics = [#tpu.dimension_semantics<parallel>], iteration_bounds = array<i64: 2>, scalar_prefetch = 0 : i64, scratch_operands = 0 : i64, tpu.core_type = #tpu.core_type<tc>, window_params = [{transform_indices = @transform_0, window_bounds = array<i64: 1, 256, 36>}, {pipeline_mode = #tpu.pipeline_mode<synchronous>, transform_indices = @transform_1, window_bounds = array<i64: 36, 32>}, {pipeline_mode = #tpu.pipeline_mode<synchronous>, transform_indices = @transform_2, window_bounds = array<i64: 1, 32>}, {pipeline_mode = #tpu.pipeline_mode<synchronous>, transform_indices = @transform_3, window_bounds = array<i64: 1, 32>}, {pipeline_mode = #tpu.pipeline_mode<synchronous>, transform_indices = @transform_4, window_bounds = array<i64: 1, 32>}, {pipeline_mode = #tpu.pipeline_mode<synchronous>, transform_indices = @transform_5, window_bounds = array<i64: 32, 32>}, {transform_indices = @transform_6, window_bounds = array<i64: 1, 1, 32>}, {transform_indices = @transform_7, window_bounds = array<i64: 1, 1, 32>}, {transform_indices = @transform_8, window_bounds = array<i64: 1, 256, 32>}]} {
    %c0 = arith.constant 0 : index
    %c0_0 = arith.constant 0 : index
    %0 = vector.load %arg2[%c0, %c0_0] : memref<36x32xf32, #tpu.memory_space<vmem>>, vector<36x32xf32>
    %cst = arith.constant dense<0.000000e+00> : vector<32xf32>
    %1 = vector.multi_reduction <add>, %0, %cst [0] : vector<36x32xf32> to vector<32xf32>
    %2 = vector.shape_cast %1 : vector<32xf32> to vector<1x32xf32>
    %cst_1 = arith.constant 3.600000e+01 : f32
    %3 = vector.broadcast %cst_1 : f32 to vector<1x32xf32>
    %4 = arith.divf %2, %3 : vector<1x32xf32>
    %5 = vector.broadcast %4 : vector<1x32xf32> to vector<36x32xf32>
    %6 = arith.subf %0, %5 : vector<36x32xf32>
    %7 = arith.mulf %6, %6 : vector<36x32xf32>
    %cst_2 = arith.constant dense<0.000000e+00> : vector<32xf32>
    %8 = vector.multi_reduction <add>, %7, %cst_2 [0] : vector<36x32xf32> to vector<32xf32>
    %9 = vector.shape_cast %8 : vector<32xf32> to vector<1x32xf32>
    %cst_3 = arith.constant 3.600000e+01 : f32
    %10 = vector.broadcast %cst_3 : f32 to vector<1x32xf32>
    %11 = arith.divf %9, %10 : vector<1x32xf32>
    %cst_4 = arith.constant 9.99999974E-6 : f32
    %12 = vector.broadcast %cst_4 : f32 to vector<1x32xf32>
    %13 = arith.addf %11, %12 : vector<1x32xf32>
    %14 = math.rsqrt %13 : vector<1x32xf32>
    %15 = vector.broadcast %14 : vector<1x32xf32> to vector<36x32xf32>
    %16 = arith.mulf %6, %15 : vector<36x32xf32>
    %c0_5 = arith.constant 0 : index
    %c0_6 = arith.constant 0 : index
    %c0_7 = arith.constant 0 : index
    %17 = vector.load %arg1[%c0_5, %c0_6, %c0_7] : memref<1x256x36xf32, #tpu.memory_space<vmem>>, vector<1x256x36xf32>
    %18 = vector.shape_cast %17 : vector<1x256x36xf32> to vector<256x36xf32>
    %cst_8 = arith.constant dense<0.000000e+00> : vector<256x32xf32>
    %19 = tpu.matmul %18, %16, %cst_8 {dimension_numbers = #tpu.dot_dimension_numbers<[1], [0], [0], [1], [0, 0, 1, 1], [], []>} : vector<256x36xf32>, vector<36x32xf32>, vector<256x32xf32> -> vector<256x32xf32>
    %c0_9 = arith.constant 0 : index
    %c0_10 = arith.constant 0 : index
    %20 = vector.load %arg3[%c0_9, %c0_10] : memref<1x32xf32, #tpu.memory_space<vmem>>, vector<1x32xf32>
    %21 = vector.broadcast %20 : vector<1x32xf32> to vector<256x32xf32>
    %22 = arith.addf %19, %21 : vector<256x32xf32>
    %c0_11 = arith.constant 0 : index
    %c0_12 = arith.constant 0 : index
    %23 = vector.load %arg6[%c0_11, %c0_12] : memref<32x32xf32, #tpu.memory_space<vmem>>, vector<32x32xf32>
    %cst_13 = arith.constant dense<0.000000e+00> : vector<256x32xf32>
    %24 = tpu.matmul %22, %23, %cst_13 {dimension_numbers = #tpu.dot_dimension_numbers<[1], [0], [0], [1], [0, 0, 1, 1], [], []>} : vector<256x32xf32>, vector<32x32xf32>, vector<256x32xf32> -> vector<256x32xf32>
    %cst_14 = arith.constant dense<0.000000e+00> : vector<32xf32>
    %25 = vector.multi_reduction <add>, %24, %cst_14 [0] : vector<256x32xf32> to vector<32xf32>
    %26 = vector.shape_cast %25 : vector<32xf32> to vector<1x32xf32>
    %cst_15 = arith.constant 9.765625E-4 : f32
    %27 = vector.broadcast %cst_15 : f32 to vector<1x32xf32>
    %28 = arith.mulf %26, %27 : vector<1x32xf32>
    %29 = vector.broadcast %28 : vector<1x32xf32> to vector<256x32xf32>
    %30 = arith.subf %22, %29 : vector<256x32xf32>
    %31 = arith.mulf %30, %30 : vector<256x32xf32>
    %cst_16 = arith.constant dense<0.000000e+00> : vector<256x32xf32>
    %32 = tpu.matmul %31, %23, %cst_16 {dimension_numbers = #tpu.dot_dimension_numbers<[1], [0], [0], [1], [0, 0, 1, 1], [], []>} : vector<256x32xf32>, vector<32x32xf32>, vector<256x32xf32> -> vector<256x32xf32>
    %cst_17 = arith.constant dense<0.000000e+00> : vector<32xf32>
    %33 = vector.multi_reduction <add>, %32, %cst_17 [0] : vector<256x32xf32> to vector<32xf32>
    %34 = vector.shape_cast %33 : vector<32xf32> to vector<1x32xf32>
    %cst_18 = arith.constant 9.765625E-4 : f32
    %35 = vector.broadcast %cst_18 : f32 to vector<1x32xf32>
    %36 = arith.mulf %34, %35 : vector<1x32xf32>
    %cst_19 = arith.constant 9.99999974E-6 : f32
    %37 = vector.broadcast %cst_19 : f32 to vector<1x32xf32>
    %38 = arith.addf %36, %37 : vector<1x32xf32>
    %39 = math.rsqrt %38 : vector<1x32xf32>
    %40 = vector.broadcast %39 : vector<1x32xf32> to vector<256x32xf32>
    %41 = arith.mulf %30, %40 : vector<256x32xf32>
    %c0_20 = arith.constant 0 : index
    %c0_21 = arith.constant 0 : index
    %42 = vector.load %arg4[%c0_20, %c0_21] : memref<1x32xf32, #tpu.memory_space<vmem>>, vector<1x32xf32>
    %43 = vector.broadcast %42 : vector<1x32xf32> to vector<256x32xf32>
    %44 = arith.mulf %41, %43 : vector<256x32xf32>
    %c0_22 = arith.constant 0 : index
    %c0_23 = arith.constant 0 : index
    %45 = vector.load %arg5[%c0_22, %c0_23] : memref<1x32xf32, #tpu.memory_space<vmem>>, vector<1x32xf32>
    %46 = vector.broadcast %45 : vector<1x32xf32> to vector<256x32xf32>
    %47 = arith.addf %44, %46 : vector<256x32xf32>
    %c0_24 = arith.constant 0 : index
    %c0_25 = arith.constant 0 : index
    %c0_26 = arith.constant 0 : index
    %48 = vector.load %arg7[%c0_24, %c0_25, %c0_26] : memref<1x1x32xf32, #tpu.memory_space<vmem>>, vector<1x1x32xf32>
    %49 = vector.shape_cast %48 : vector<1x1x32xf32> to vector<1x32xf32>
    %cst_27 = arith.constant 1.000000e+00 : f32
    %50 = vector.broadcast %cst_27 : f32 to vector<1x32xf32>
    %51 = arith.addf %49, %50 : vector<1x32xf32>
    %52 = vector.broadcast %51 : vector<1x32xf32> to vector<256x32xf32>
    %53 = arith.mulf %47, %52 : vector<256x32xf32>
    %c0_28 = arith.constant 0 : index
    %c0_29 = arith.constant 0 : index
    %c0_30 = arith.constant 0 : index
    %54 = vector.load %arg8[%c0_28, %c0_29, %c0_30] : memref<1x1x32xf32, #tpu.memory_space<vmem>>, vector<1x1x32xf32>
    %55 = vector.shape_cast %54 : vector<1x1x32xf32> to vector<1x32xf32>
    %56 = vector.broadcast %55 : vector<1x32xf32> to vector<256x32xf32>
    %57 = arith.addf %53, %56 : vector<256x32xf32>
    %58 = arith.negf %57 : vector<256x32xf32>
    %59 = math.exp %58 : vector<256x32xf32>
    %cst_31 = arith.constant 1.000000e+00 : f32
    %60 = vector.broadcast %cst_31 : f32 to vector<256x32xf32>
    %61 = arith.addf %60, %59 : vector<256x32xf32>
    %62 = arith.divf %60, %61 : vector<256x32xf32>
    %63 = arith.mulf %57, %62 : vector<256x32xf32>
    %c0_32 = arith.constant 0 : index
    %c0_33 = arith.constant 0 : index
    %c0_34 = arith.constant 0 : index
    %64 = vector.load %arg9[%c0_32, %c0_33, %c0_34] : memref<1x256x32xf32, #tpu.memory_space<vmem>>, vector<1x256x32xf32>
    %65 = vector.shape_cast %64 : vector<1x256x32xf32> to vector<256x32xf32>
    %66 = vector.shape_cast %63 : vector<256x32xf32> to vector<1x256x32xf32>
    tpu.vector_store %arg9[%c0_32, %c0_33, %c0_34], %66 {strides = array<i32>} : memref<1x256x32xf32, #tpu.memory_space<vmem>>, vector<1x256x32xf32>,
    return
  }
  func.func @transform_0(%arg0: i32) -> (i32, i32, i32) {
    %c0_i32 = arith.constant 0 : i32
    %c0_i32_0 = arith.constant 0 : i32
    %c0_i32_1 = arith.constant 0 : i32
    return %arg0, %c0_i32, %c0_i32_0 : i32, i32, i32
  }
  func.func @transform_1(%arg0: i32) -> (i32, i32) {
    %c0_i32 = arith.constant 0 : i32
    %c0_i32_0 = arith.constant 0 : i32
    %c0_i32_1 = arith.constant 0 : i32
    return %c0_i32, %c0_i32_0 : i32, i32
  }
  func.func @transform_2(%arg0: i32) -> (i32, i32) {
    %c0_i32 = arith.constant 0 : i32
    %c0_i32_0 = arith.constant 0 : i32
    %c0_i32_1 = arith.constant 0 : i32
    return %c0_i32, %c0_i32_0 : i32, i32
  }
  func.func @transform_3(%arg0: i32) -> (i32, i32) {
    %c0_i32 = arith.constant 0 : i32
    %c0_i32_0 = arith.constant 0 : i32
    %c0_i32_1 = arith.constant 0 : i32
    return %c0_i32, %c0_i32_0 : i32, i32
  }
  func.func @transform_4(%arg0: i32) -> (i32, i32) {
    %c0_i32 = arith.constant 0 : i32
    %c0_i32_0 = arith.constant 0 : i32
    %c0_i32_1 = arith.constant 0 : i32
    return %c0_i32, %c0_i32_0 : i32, i32
  }
  func.func @transform_5(%arg0: i32) -> (i32, i32) {
    %c0_i32 = arith.constant 0 : i32
    %c0_i32_0 = arith.constant 0 : i32
    %c0_i32_1 = arith.constant 0 : i32
    return %c0_i32, %c0_i32_0 : i32, i32
  }
  func.func @transform_6(%arg0: i32) -> (i32, i32, i32) {
    %c0_i32 = arith.constant 0 : i32
    %c0_i32_0 = arith.constant 0 : i32
    %c0_i32_1 = arith.constant 0 : i32
    return %arg0, %c0_i32, %c0_i32_0 : i32, i32, i32
  }
  func.func @transform_7(%arg0: i32) -> (i32, i32, i32) {
    %c0_i32 = arith.constant 0 : i32
    %c0_i32_0 = arith.constant 0 : i32
    %c0_i32_1 = arith.constant 0 : i32
    return %arg0, %c0_i32, %c0_i32_0 : i32, i32, i32
  }
  func.func @transform_8(%arg0: i32) -> (i32, i32, i32) {
    %c0_i32 = arith.constant 0 : i32
    %c0_i32_0 = arith.constant 0 : i32
    %c0_i32_1 = arith.constant 0 : i32
    return %arg0, %c0_i32, %c0_i32_0 : i32, i32, i32
  }
}

</mosaic_0001>

<bundles_post_ra>
// kernel: tpu_custom_call.1
= control target key start
LH: loop header
LB: loop body
LE: loop exit
PB: predicated region body
PF: predicated region fallthrough
CT: control target
= control target key end

     0   :  { %s2752_s27 = smov 0   ;;  %s3759_s0 = inlined_call_operand.vmem [shape: f32[2,256,36], index: 0, kind: input, shape index: {}]   ;;  %s3760_s1 = inlined_call_operand.vmem [shape: f32[36,32], index: 1, kind: input, shape index: {}]   ;;  %s3761_s2 = inlined_call_operand.vmem [shape: f32[1,32], index: 2, kind: input, shape index: {}]   ;;  %s3762_s3 = inlined_call_operand.vmem [shape: f32[1,32], index: 3, kind: input, shape index: {}]   ;;  %s3763_s4 = inlined_call_operand.vmem [shape: f32[1,32], index: 4, kind: input, shape index: {}]   ;;  %s3764_s5 = inlined_call_operand.vmem [shape: f32[32,32], index: 5, kind: input, shape index: {}]   ;;  %s3765_s6 = inlined_call_operand.vmem [shape: f32[2,1,32], index: 6, kind: input, shape index: {}]   ;;  %s3766_s7 = inlined_call_operand.vmem [shape: f32[2,1,32], index: 7, kind: input, shape index: {}]   ;;  %s3767_s8 = inlined_call_operand.vmem [shape: f32[2,256,32], index: 8, kind: output, shape index: {}]  }
   0x1 LB: > { %s2126_s28 = sadd.s32 4294967295, %s2705_s27   ;;  %p2130_p0 = scmp.ge.s32.totalorder %s2705_s27, 1  ;;  %s2705_s27 = sphi %s2752_s27, %s18_s27  }
   0x2   : > { %p278_p1 = scmp.lt.s32.totalorder %s2705_s27, 3 }
   0x4   : > { %p279_p2 = pnand %p2130_p0, %p278_p1 }
   0x6   : > { %282 = sbr.rel (%p279_p2) target bundleno = 967 (0x3c7), region = 52 }
   0xb   : > { %v334_v0 = vld [vmem:[%s3760_s1] sm:$0xff]  ;;  %v335_v1 = vld [vmem:[%s3760_s1 + $0x8] sm:$0xff]  ;;  %v336_v2 = vld [vmem:[%s3760_s1 + $0x10] sm:$0xff]  ;;  %vm339_vm0 = vcmask 261120   ;;  %vm347_vm1 = vcmask 257024   ;;  %p318_p3 = scmp.lt.s32.totalorder %s2126_s28, 1 }
   0xc   : > { %v337_v3 = vld [vmem:[%s3760_s1 + $0x18] sm:$0xff]  ;;  %v340_v4 = vsel %vm339_vm0, %v334_v0, 0.0  ;;  %v341_v5 = vsel %vm339_vm0, %v335_v1, 0.0  ;;  %v343_v6 = vsel %vm339_vm0, %v336_v2, 0.0  ;;  %v338_v7 = vld [vmem:[%s3760_s1 + $0x20] sm:$0xf] }
   0xd   : > { %v342_v8 = vadd.f32 %v341_v5, %v340_v4  ;;  %v345_v9 = vsel %vm339_vm0, %v337_v3, 0.0  ;;  %s3772_s28 = smov (!%p318_p3, %s2126_s28), 1  ;;  %v348_v11 = vsel %vm347_vm1, %v338_v7, 0.0  ;;  %vm430_vm2 = vcmask 293888   ;;  %v2795_v20 = vld [vmem:[%s3764_s5 + $0x18] sm:$0xff]  ;;  %v2801_v22 = vld [vmem:[%s3764_s5 + $0x10] sm:$0xff] }
   0xe   : > { %s2270_s17 = sshll.u32 %s3772_s28, 8  ;;  %2551 = vmatprep.subr.mxu1 %v2795_v20  ;;  %v2808_v24 = vld [vmem:[%s3764_s5 + $0x8] sm:$0xff]  ;;  %v2815_v30 = vld [vmem:[%s3764_s5] sm:$0xff]  ;;  %vm527_vm3 = vcmask 1043456   ;;  %s325_s13 = scalar_lea.vmem %s3765_s6, %s3772_s28 }
   0xf   : > { %v344_v10 = vadd.f32 %v343_v6, %v342_v8  ;;  %s2788_s20 = scalar_lea.vmem %s3759_s0, %s2270_s17  ;;  %2555 = vmatpush3.msra.mxu1 %v2795_v20  ;;  %s328_s21 = scalar_lea.vmem %s3766_s7, %s3772_s28 }
  0x10   : > { %v391_v14 = vld [vmem:[%s2788_s20] sm:$0xff]  ;;  %2552 = vmatprep.subr.mxu1 %v2801_v22  ;;  %v392_v59 = vld [vmem:[%s2788_s20 + $0x8] sm:$0xff]  ;;  %v393_v60 = vld [vmem:[%s2788_s20 + $0x10] sm:$0xff]  ;;  %s3654_s24 = scalar_lea.vmem %s3767_s8, %s2270_s17 }
  0x11   : > { %v346_v12 = vadd.f32 %v345_v9, %v344_v10  ;;  %2391 = vmatprep.mubr.msk.f32.mxu0 %vm430_vm2, %v391_v14  ;;  %2556 = vmatpush3.msra.mxu1 %v2801_v22  ;;  %v394_v61 = vld [vmem:[%s2788_s20 + $0x18] sm:$0xff]  ;;  %v395_v62 = vld [vmem:[%s2788_s20 + $0x20] sm:$0xff]  ;;  %v396_v63 = vld [vmem:[%s2788_s20 + $0x28] sm:$0xff] }
  0x12   : > { %2553 = vmatprep.subr.mxu1 %v2808_v24  ;;  %v401_v4 = vld [vmem:[%s2788_s20 + $0x50] sm:$0xff]  ;;  %v402_v5 = vld [vmem:[%s2788_s20 + $0x58] sm:$0xff]  ;;  %v403_v6 = vld [vmem:[%s2788_s20 + $0x60] sm:$0xff] }
  0x13   : > { %v349_v13 = vadd.f32 %v348_v11, %v346_v12  ;;  %2557 = vmatpush3.msra.mxu1 %v2808_v24  ;;  %v405_v8 = vld [vmem:[%s2788_s20 + $0x70] sm:$0xff]  ;;  %v406_v9 = vld [vmem:[%s2788_s20 + $0x78] sm:$0xff]  ;;  %v407_v10 = vld [vmem:[%s2788_s20 + $0x80] sm:$0xff] }
  0x14   : > { %2554 = vmatprep.subr.mxu1 %v2815_v30  ;;  %v408_v11 = vld [vmem:[%s2788_s20 + $0x88] sm:$0xff]  ;;  %v409_v12 = vld [vmem:[%s2788_s20 + $0x90] sm:$0xff]  ;;  %v411_v14 = vld [vmem:[%s2788_s20 + $0xa0] sm:$0xff] }
  0x15   : > { %v350_v15 = vrot.slane %v349_v13, 4  ;;  %2558 = vmatpush3.msra.mxu1 %v2815_v30 }
  0x16   : > { %2495 = vmatprep.subr.mxu1 %v2795_v20 }
  0x17   : > { %v351_v16 = vadd.f32 %v350_v15, %v349_v13  ;;  %v410_v13 = vld [vmem:[%s2788_s20 + $0x98] sm:$0xff]  ;;  %v412_v15 = vld [vmem:[%s2788_s20 + $0xa8] sm:$0xff] }
  0x19   : > { %v352_v17 = vrot.slane %v351_v16, 2 }
  0x1b   : > { %v353_v18 = vadd.f32 %v352_v17, %v351_v16  ;;  %v413_v16 = vld [vmem:[%s2788_s20 + $0xb0] sm:$0xff]  ;;  %v414_v17 = vld [vmem:[%s2788_s20 + $0xb8] sm:$0xff] }
  0x1d   : > { %v354_v19 = vrot.slane %v353_v18, 1 }
  0x1f   : > { %v355_v21 = vadd.f32 %v354_v19, %v353_v18  ;;  %v415_v18 = vld [vmem:[%s2788_s20 + $0xc0] sm:$0xff]  ;;  %v416_v19 = vld [vmem:[%s2788_s20 + $0xc8] sm:$0xff] }
  0x21   : > { %v357_v23 = vmul.f32 0.027777778, %v355_v21  ;;  %v417_v21 = vld [vmem:[%s2788_s20 + $0xd0] sm:$0xff] }
  0x23   : > { %v358_v25 = vsub.f32 %v334_v0, %v357_v23  ;;  %v359_v26 = vsub.f32 %v335_v1, %v357_v23  ;;  %v360_v27 = vsub.f32 %v336_v2, %v357_v23  ;;  %v361_v28 = vsub.f32 %v337_v3, %v357_v23  ;;  %v397_v0 = vld [vmem:[%s2788_s20 + $0x30] sm:$0xff]  ;;  %v398_v1 = vld [vmem:[%s2788_s20 + $0x38] sm:$0xff]  ;;  %v399_v2 = vld [vmem:[%s2788_s20 + $0x40] sm:$0xff] }
  0x24   : > { %v362_v29 = vsub.f32 %v338_v7, %v357_v23  ;;  %v400_v3 = vld [vmem:[%s2788_s20 + $0x48] sm:$0xff]  ;;  %v418_v23 = vld [vmem:[%s2788_s20 + $0xd8] sm:$0xff] }
  0x25   : > { %v363_v31 = vmul.f32 %v358_v25, %v358_v25  ;;  %v364_v32 = vmul.f32 %v359_v26, %v359_v26  ;;  %v365_v33 = vmul.f32 %v360_v27, %v360_v27  ;;  %v366_v34 = vmul.f32 %v361_v28, %v361_v28  ;;  %v404_v7 = vld [vmem:[%s2788_s20 + $0x68] sm:$0xff] }
  0x26   : > { %v367_v35 = vmul.f32 %v362_v29, %v362_v29 }
  0x27   : > { %v368_v36 = vsel %vm339_vm0, %v363_v31, 0.0  ;;  %v369_v37 = vsel %vm339_vm0, %v364_v32, 0.0  ;;  %v371_v38 = vsel %vm339_vm0, %v365_v33, 0.0  ;;  %v373_v40 = vsel %vm339_vm0, %v366_v34, 0.0  ;;  %v2899_v31 = vld [vmem:[%s3761_s2] ss:$0 sm:$0xff] }
  0x28   : > { %v370_v39 = vadd.f32 %v369_v37, %v368_v36  ;;  %v375_v42 = vsel %vm347_vm1, %v367_v35, 0.0 }
  0x2a   : > { %v372_v41 = vadd.f32 %v371_v38, %v370_v39 }
  0x2c   : > { %v374_v43 = vadd.f32 %v373_v40, %v372_v41 }
  0x2e   : > { %v376_v44 = vadd.f32 %v375_v42, %v374_v43 }
  0x30   : > { %v377_v45 = vrot.slane %v376_v44, 4 }
  0x32   : > { %v378_v46 = vadd.f32 %v377_v45, %v376_v44 }
  0x34   : > { %v379_v47 = vrot.slane %v378_v46, 2 }
  0x36   : > { %v380_v48 = vadd.f32 %v379_v47, %v378_v46 }
  0x38   : > { %v381_v49 = vrot.slane %v380_v48, 1 }
  0x3a   : > { %v382_v50 = vadd.f32 %v381_v49, %v380_v48 }
  0x3c   : > { %v383_v51 = vmul.f32 0.027777778, %v382_v50 }
  0x3e   : > { %v384_v52 = vadd.f32 1e-05, %v383_v51 }
  0x40   : > { %2567 = vrsqrt.f32 %v384_v52 }
  0x4d   : > { %v2568_v53 = vpop.eup %2567 }
  0x4e   : > { %v390_v54 = vmul.f32 %v2568_v53, %v362_v29  ;;  %v389_v55 = vmul.f32 %v2568_v53, %v361_v28  ;;  %v388_v56 = vmul.f32 %v2568_v53, %v360_v27  ;;  %v387_v57 = vmul.f32 %v2568_v53, %v359_v26  ;;  %v420_v26 = vld [vmem:[%s2788_s20 + $0xe8] sm:$0xff]  ;;  %v421_v27 = vld [vmem:[%s2788_s20 + $0xf0] sm:$0xff]  ;;  %v422_v28 = vld [vmem:[%s2788_s20 + $0xf8] sm:$0xff] }
  0x4f   : > { %v386_v58 = vmul.f32 %v2568_v53, %v358_v25  ;;  %v419_v25 = vld [vmem:[%s2788_s20 + $0xe0] sm:$0xff] }
  0x50   : > { %2381 = vmatprep.subr.msk.mxu0 %vm527_vm3, %v390_v54 }
  0x51   : > { %2382 = vmatpush3.msk.msra.mxu0 %vm527_vm3, %v390_v54 }
  0x52   : > { %2383 = vmatprep.subr.mxu0 %v389_v55 }
  0x53   : > { %2384 = vmatpush3.msra.mxu0 %v389_v55 }
  0x54   : > { %2385 = vmatprep.subr.mxu0 %v388_v56 }
  0x55   : > { %2386 = vmatpush3.msra.mxu0 %v388_v56 }
  0x56   : > { %2387 = vmatprep.subr.mxu0 %v387_v57 }
  0x57   : > { %2388 = vmatpush3.msra.mxu0 %v387_v57 }
  0x58   : > { %2389 = vmatprep.subr.mxu0 %v386_v58 }
  0x59   : > { %2390 = vmatpush3.msra.mxu0 %v386_v58 }
  0x5a   : > { %2392 = vmatmul.mubr.msk.f32.vlgmr.msra.gmra.mxu0 %vm430_vm2, %v392_v59  ;;  %2439 = vmatprep.subr.mxu0 %v2795_v20 }
  0x5b   : > { %2394 = vmatprep.mubr.msk.f32.mxu0 %vm430_vm2, %v393_v60  ;;  %2440 = vmatpush3.msra.mxu0 %v2795_v20 }
  0x5c   : > { %2441 = vmatprep.subr.mxu0 %v2801_v22 }
  0x5d   : > { %2442 = vmatpush3.msra.mxu0 %v2801_v22 }
  0x5e   : > { %2395 = vmatmul.mubr.msk.f32.gmra.mxu0 %vm430_vm2, %v394_v61  ;;  %2443 = vmatprep.subr.mxu0 %v2808_v24 }
  0x5f   : > { %2397 = vmatprep.mubr.msk.f32.mxu0 %vm430_vm2, %v395_v62  ;;  %2444 = vmatpush3.msra.mxu0 %v2808_v24 }
  0x60   : > { %2445 = vmatprep.subr.mxu0 %v2815_v30 }
  0x61   : > { %2446 = vmatpush3.msra.mxu0 %v2815_v30 }
  0x62   : > { %2398 = vmatmul.mubr.msk.f32.gmra.mxu0 %vm430_vm2, %v396_v63 }
  0x63   : > { %2400 = vmatprep.mubr.msk.f32.mxu0 %vm430_vm2, %v397_v0 }
  0x66   : > { %2401 = vmatmul.mubr.msk.f32.gmra.mxu0 %vm430_vm2, %v398_v1 }
  0x67   : > { %2403 = vmatprep.mubr.msk.f32.mxu0 %vm430_vm2, %v399_v2 }
  0x6a   : > { %2404 = vmatmul.mubr.msk.f32.gmra.mxu0 %vm430_vm2, %v400_v3 }
  0x6b   : > { %2406 = vmatprep.mubr.msk.f32.mxu0 %vm430_vm2, %v401_v4 }
  0x6e   : > { %2407 = vmatmul.mubr.msk.f32.gmra.mxu0 %vm430_vm2, %v402_v5 }
  0x6f   : > { %2409 = vmatprep.mubr.msk.f32.mxu0 %vm430_vm2, %v403_v6 }
  0x72   : > { %2410 = vmatmul.mubr.msk.f32.gmra.mxu0 %vm430_vm2, %v404_v7 }
  0x73   : > { %2412 = vmatprep.mubr.msk.f32.mxu0 %vm430_vm2, %v405_v8 }
  0x76   : > { %2413 = vmatmul.mubr.msk.f32.gmra.mxu0 %vm430_vm2, %v406_v9 }
  0x77   : > { %2415 = vmatprep.mubr.msk.f32.mxu0 %vm430_vm2, %v407_v10 }
  0x7a   : > { %2416 = vmatmul.mubr.msk.f32.gmra.mxu0 %vm430_vm2, %v408_v11 }
  0x7b   : > { %2418 = vmatprep.mubr.msk.f32.mxu0 %vm430_vm2, %v409_v12 }
  0x7e   : > { %2419 = vmatmul.mubr.msk.f32.gmra.mxu0 %vm430_vm2, %v410_v13 }
  0x7f   : > { %2421 = vmatprep.mubr.msk.f32.mxu0 %vm430_vm2, %v411_v14 }
  0x82   : > { %2422 = vmatmul.mubr.msk.f32.gmra.mxu0 %vm430_vm2, %v412_v15 }
  0x83   : > { %2424 = vmatprep.mubr.msk.f32.mxu0 %vm430_vm2, %v413_v16 }
  0x86   : > { %2425 = vmatmul.mubr.msk.f32.gmra.mxu0 %vm430_vm2, %v414_v17 }
  0x87   : > { %2427 = vmatprep.mubr.msk.f32.mxu0 %vm430_vm2, %v415_v18 }
  0x8a   : > { %2428 = vmatmul.mubr.msk.f32.gmra.mxu0 %vm430_vm2, %v416_v19 }
  0x8b   : > { %2430 = vmatprep.mubr.msk.f32.mxu0 %vm430_vm2, %v417_v21 }
  0x8e   : > { %2431 = vmatmul.mubr.msk.f32.gmra.mxu0 %vm430_vm2, %v418_v23 }
  0x8f   : > { %2433 = vmatprep.mubr.msk.f32.mxu0 %vm430_vm2, %v419_v25 }
  0x92   : > { %2434 = vmatmul.mubr.msk.f32.gmra.mxu0 %vm430_vm2, %v420_v26 }
  0x93   : > { %2436 = vmatprep.mubr.msk.f32.mxu0 %vm430_vm2, %v421_v27 }
  0x96   : > { %2437 = vmatmul.mubr.msk.f32.gmra.mxu0 %vm430_vm2, %v422_v28 }
 0x11a   : > { %v2393_v29 = vpop.f32.mrf.mxu0 }
 0x11b   : > { %v2905_v34 = vadd.f32 %v2393_v29, %v2899_v31 }
 0x11c   : > { %v597_v32 = vpop.f32.mrf.mxu0 }
 0x11d   : > { %v2902_v33 = vadd.f32 %v2899_v31, %v597_v32 }
 0x11e   : > { %v2396_v35 = vpop.f32.mrf.mxu0 }
 0x11f   : > { %2447 = vmatprep.mubr.msk.f32.mxu0 %vm339_vm0, %v2902_v33  ;;  %v2915_v38 = vadd.f32 %v2396_v35, %v2899_v31 }
 0x120   : > { %v607_v36 = vpop.f32.mrf.mxu0  ;;  %2448 = vmatmul.mubr.msk.f32.vlgmr.msra.gmra.mxu0 %vm339_vm0, %v2905_v34 }
 0x121   : > { %v2912_v37 = vadd.f32 %v2899_v31, %v607_v36 }
 0x122   : > { %v2399_v39 = vpop.f32.mrf.mxu0 }
 0x123   : > { %2450 = vmatprep.mubr.msk.f32.mxu0 %vm339_vm0, %v2912_v37  ;;  %v2925_v42 = vadd.f32 %v2399_v39, %v2899_v31 }
 0x124   : > { %v617_v40 = vpop.f32.mrf.mxu0  ;;  %2451 = vmatmul.mubr.msk.f32.gmra.mxu0 %vm339_vm0, %v2915_v38 }
 0x125   : > { %v2922_v41 = vadd.f32 %v2899_v31, %v617_v40 }
 0x126   : > { %v2402_v43 = vpop.f32.mrf.mxu0 }
 0x127   : > { %2453 = vmatprep.mubr.msk.f32.mxu0 %vm339_vm0, %v2922_v41  ;;  %v2935_v46 = vadd.f32 %v2402_v43, %v2899_v31 }
 0x128   : > { %v627_v44 = vpop.f32.mrf.mxu0  ;;  %2454 = vmatmul.mubr.msk.f32.gmra.mxu0 %vm339_vm0, %v2925_v42 }
 0x129   : > { %v2932_v45 = vadd.f32 %v2899_v31, %v627_v44 }
 0x12a   : > { %v2405_v47 = vpop.f32.mrf.mxu0 }
 0x12b   : > { %2456 = vmatprep.mubr.msk.f32.mxu0 %vm339_vm0, %v2932_v45  ;;  %v2945_v50 = vadd.f32 %v2405_v47, %v2899_v31 }
 0x12c   : > { %v637_v48 = vpop.f32.mrf.mxu0  ;;  %2457 = vmatmul.mubr.msk.f32.gmra.mxu0 %vm339_vm0, %v2935_v46 }
 0x12d   : > { %v2942_v49 = vadd.f32 %v2899_v31, %v637_v48 }
 0x12e   : > { %v2408_v51 = vpop.f32.mrf.mxu0 }
 0x12f   : > { %2459 = vmatprep.mubr.msk.f32.mxu0 %vm339_vm0, %v2942_v49  ;;  %v2955_v54 = vadd.f32 %v2408_v51, %v2899_v31 }
 0x130   : > { %v647_v52 = vpop.f32.mrf.mxu0  ;;  %2460 = vmatmul.mubr.msk.f32.gmra.mxu0 %vm339_vm0, %v2945_v50 }
 0x131   : > { %v2952_v53 = vadd.f32 %v2899_v31, %v647_v52 }
 0x132   : > { %v2411_v55 = vpop.f32.mrf.mxu0 }
 0x133   : > { %2462 = vmatprep.mubr.msk.f32.mxu0 %vm339_vm0, %v2952_v53  ;;  %v2965_v58 = vadd.f32 %v2411_v55, %v2899_v31 }
 0x134   : > { %v657_v56 = vpop.f32.mrf.mxu0  ;;  %2463 = vmatmul.mubr.msk.f32.gmra.mxu0 %vm339_vm0, %v2955_v54 }
 0x135   : > { %v2962_v57 = vadd.f32 %v2899_v31, %v657_v56 }
 0x136   : > { %v2414_v59 = vpop.f32.mrf.mxu0 }
 0x137   : > { %2465 = vmatprep.mubr.msk.f32.mxu0 %vm339_vm0, %v2962_v57  ;;  %v2975_v62 = vadd.f32 %v2414_v59, %v2899_v31 }
 0x138   : > { %v667_v60 = vpop.f32.mrf.mxu0  ;;  %2466 = vmatmul.mubr.msk.f32.gmra.mxu0 %vm339_vm0, %v2965_v58 }
 0x139   : > { %v2972_v61 = vadd.f32 %v2899_v31, %v667_v60 }
 0x13a   : > { %v2417_v63 = vpop.f32.mrf.mxu0 }
 0x13b   : > { %2468 = vmatprep.mubr.msk.f32.mxu1 %vm339_vm0, %v2972_v61  ;;  %v2986_v2 = vadd.f32 %v2417_v63, %v2899_v31 }
 0x13c   : > { %v677_v0 = vpop.f32.mrf.mxu0  ;;  %2469 = vmatmul.mubr.msk.f32.vlgmr.msra.gmra.mxu1 %vm339_vm0, %v2975_v62 }
 0x13d   : > { %v2982_v1 = vadd.f32 %v2899_v31, %v677_v0  ;;  %2496 = vmatpush3.msra.mxu1 %v2795_v20 }
 0x13e   : > { %v2420_v3 = vpop.f32.mrf.mxu0  ;;  %2497 = vmatprep.subr.mxu1 %v2801_v22 }
 0x13f   : > { %2471 = vmatprep.mubr.msk.f32.mxu1 %vm339_vm0, %v2982_v1  ;;  %2498 = vmatpush3.msra.mxu1 %v2801_v22  ;;  %v3000_v20 = vadd.f32 %v2420_v3, %v2899_v31 }
 0x140   : > { %v687_v4 = vpop.f32.mrf.mxu0  ;;  %2472 = vmatmul.mubr.msk.f32.gmra.mxu1 %vm339_vm0, %v2986_v2  ;;  %2499 = vmatprep.subr.mxu1 %v2808_v24 }
 0x141   : > { %v2996_v5 = vadd.f32 %v2899_v31, %v687_v4  ;;  %2500 = vmatpush3.msra.mxu1 %v2808_v24 }
 0x142   : > { %v2423_v6 = vpop.f32.mrf.mxu0  ;;  %2501 = vmatprep.subr.mxu1 %v2815_v30 }
 0x143   : > { %2474 = vmatprep.mubr.msk.f32.mxu1 %vm339_vm0, %v2996_v5  ;;  %2502 = vmatpush3.msra.mxu1 %v2815_v30  ;;  %v3012_v24 = vadd.f32 %v2423_v6, %v2899_v31 }
 0x144   : > { %v697_v22 = vpop.f32.mrf.mxu0  ;;  %2475 = vmatmul.mubr.msk.f32.gmra.mxu1 %vm339_vm0, %v3000_v20 }
 0x145   : > { %v3009_v7 = vadd.f32 %v2899_v31, %v697_v22 }
 0x146   : > { %v2426_v8 = vpop.f32.mrf.mxu0 }
 0x147   : > { %2477 = vmatprep.mubr.msk.f32.mxu1 %vm339_vm0, %v3009_v7  ;;  %v3022_v10 = vadd.f32 %v2426_v8, %v2899_v31 }
 0x148   : > { %v707_v9 = vpop.f32.mrf.mxu0  ;;  %2478 = vmatmul.mubr.msk.f32.gmra.mxu1 %vm339_vm0, %v3012_v24 }
 0x149   : > { %v3019_v30 = vadd.f32 %v2899_v31, %v707_v9 }
 0x14a   : > { %v2429_v11 = vpop.f32.mrf.mxu0 }
 0x14b   : > { %2480 = vmatprep.mubr.msk.f32.mxu1 %vm339_vm0, %v3019_v30  ;;  %v3032_v14 = vadd.f32 %v2429_v11, %v2899_v31 }
 0x14c   : > { %v717_v12 = vpop.f32.mrf.mxu0  ;;  %2481 = vmatmul.mubr.msk.f32.gmra.mxu1 %vm339_vm0, %v3022_v10 }
 0x14d   : > { %v3029_v13 = vadd.f32 %v2899_v31, %v717_v12 }
 0x14e   : > { %v2432_v15 = vpop.f32.mrf.mxu0 }
 0x14f   : > { %2483 = vmatprep.mubr.msk.f32.mxu1 %vm339_vm0, %v3029_v13  ;;  %v3042_v18 = vadd.f32 %v2432_v15, %v2899_v31 }
 0x150   : > { %v727_v16 = vpop.f32.mrf.mxu0  ;;  %2484 = vmatmul.mubr.msk.f32.gmra.mxu1 %vm339_vm0, %v3032_v14 }
 0x151   : > { %v3039_v17 = vadd.f32 %v2899_v31, %v727_v16 }
 0x152   : > { %v2435_v19 = vpop.f32.mrf.mxu0 }
 0x153   : > { %2486 = vmatprep.mubr.msk.f32.mxu1 %vm339_vm0, %v3039_v17  ;;  %v3052_v25 = vadd.f32 %v2435_v19, %v2899_v31 }
 0x154   : > { %v737_v21 = vpop.f32.mrf.mxu0  ;;  %2487 = vmatmul.mubr.msk.f32.gmra.mxu1 %vm339_vm0, %v3042_v18 }
 0x155   : > { %v3049_v23 = vadd.f32 %v2899_v31, %v737_v21 }
 0x156   : > { %v2438_v26 = vpop.f32.mrf.mxu0 }
 0x157   : > { %2489 = vmatprep.mubr.msk.f32.mxu1 %vm339_vm0, %v3049_v23  ;;  %v3062_v29 = vadd.f32 %v2438_v26, %v2899_v31 }
 0x158   : > { %v747_v27 = vpop.f32.mrf.mxu0  ;;  %2490 = vmatmul.mubr.msk.f32.gmra.mxu1 %vm339_vm0, %v3052_v25 }
 0x159   : > { %v3059_v28 = vadd.f32 %v2899_v31, %v747_v27 }
 0x15b   : > { %2492 = vmatprep.mubr.msk.f32.mxu1 %vm339_vm0, %v3059_v28 }
 0x15c   : > { %2493 = vmatmul.mubr.msk.f32.gmra.mxu1 %vm339_vm0, %v3062_v29 }
 0x1e0   : > { %v2449_v32 = vpop.f32.mrf.mxu0 }
 0x1e1   : > { %v1082_v40 = vsel %vm339_vm0, %v2449_v32, 0.0 }
 0x1e2   : > { %v922_v35 = vpop.f32.mrf.mxu0 }
 0x1e3   : > { %v1081_v36 = vsel %vm339_vm0, %v922_v35, 0.0 }
 0x1e4   : > { %v2452_v39 = vpop.f32.mrf.mxu0  ;;  %v1083_v43 = vadd.f32 %v1082_v40, %v1081_v36 }
 0x1e5   : > { %v1086_v51 = vsel %vm339_vm0, %v2452_v39, 0.0 }
 0x1e6   : > { %v932_v44 = vpop.f32.mrf.mxu0 }
 0x1e7   : > { %v1084_v47 = vsel %vm339_vm0, %v932_v44, 0.0 }
 0x1e8   : > { %v1085_v48 = vadd.f32 %v1084_v47, %v1083_v43  ;;  %v2455_v31 = vpop.f32.mrf.mxu0 }
 0x1e9   : > { %v1090_v63 = vsel %vm339_vm0, %v2455_v31, 0.0 }
 0x1ea   : > { %v942_v52 = vpop.f32.mrf.mxu0  ;;  %v1087_v55 = vadd.f32 %v1086_v51, %v1085_v48 }
 0x1eb   : > { %v1088_v56 = vsel %vm339_vm0, %v942_v52, 0.0 }
 0x1ec   : > { %v1089_v59 = vadd.f32 %v1088_v56, %v1087_v55  ;;  %v2458_v60 = vpop.f32.mrf.mxu0 }
 0x1ed   : > { %v1094_v8 = vsel %vm339_vm0, %v2458_v60, 0.0 }
 0x1ee   : > { %v952_v0 = vpop.f32.mrf.mxu0  ;;  %v1091_v3 = vadd.f32 %v1090_v63, %v1089_v59 }
 0x1ef   : > { %v1092_v4 = vsel %vm339_vm0, %v952_v0, 0.0 }
 0x1f0   : > { %v1093_v6 = vadd.f32 %v1092_v4, %v1091_v3  ;;  %v2461_v22 = vpop.f32.mrf.mxu0 }
 0x1f1   : > { %v1098_v19 = vsel %vm339_vm0, %v2461_v22, 0.0 }
 0x1f2   : > { %v962_v9 = vpop.f32.mrf.mxu0  ;;  %v1095_v11 = vadd.f32 %v1094_v8, %v1093_v6 }
 0x1f3   : > { %v1096_v12 = vsel %vm339_vm0, %v962_v9, 0.0 }
 0x1f4   : > { %v1097_v15 = vadd.f32 %v1096_v12, %v1095_v11  ;;  %v2464_v16 = vpop.f32.mrf.mxu0 }
 0x1f5   : > { %v1102_v36 = vsel %vm339_vm0, %v2464_v16, 0.0 }
 0x1f6   : > { %v972_v21 = vpop.f32.mrf.mxu0  ;;  %v1099_v26 = vadd.f32 %v1098_v19, %v1097_v15 }
 0x1f7   : > { %v1100_v27 = vsel %vm339_vm0, %v972_v21, 0.0 }
 0x1f8   : > { %v1101_v32 = vadd.f32 %v1100_v27, %v1099_v26  ;;  %v2467_v35 = vpop.f32.mrf.mxu0 }
 0x1f9   : > { %v1106_v48 = vsel %vm339_vm0, %v2467_v35, 0.0 }
 0x1fa   : > { %v982_v39 = vpop.f32.mrf.mxu0  ;;  %v1103_v40 = vadd.f32 %v1102_v36, %v1101_v32 }
 0x1fb   : > { %v1104_v43 = vsel %vm339_vm0, %v982_v39, 0.0 }
 0x1fc   : > { %v1105_v44 = vadd.f32 %v1104_v43, %v1103_v40  ;;  %v2470_v47 = vpop.f32.mrf.mxu1 }
 0x1fd   : > { %v1110_v59 = vsel %vm339_vm0, %v2470_v47, 0.0 }
 0x1fe   : > { %v992_v31 = vpop.f32.mrf.mxu1  ;;  %v1107_v51 = vadd.f32 %v1106_v48, %v1105_v44 }
 0x1ff   : > { %v1108_v52 = vsel %vm339_vm0, %v992_v31, 0.0 }
 0x200   : > { %v1109_v55 = vadd.f32 %v1108_v52, %v1107_v51  ;;  %v2473_v56 = vpop.f32.mrf.mxu1 }
 0x201   : > { %v1114_v6 = vsel %vm339_vm0, %v2473_v56, 0.0 }
 0x202   : > { %v1002_v60 = vpop.f32.mrf.mxu1  ;;  %v1111_v63 = vadd.f32 %v1110_v59, %v1109_v55 }
 0x203   : > { %v1112_v0 = vsel %vm339_vm0, %v1002_v60, 0.0 }
 0x204   : > { %v1113_v3 = vadd.f32 %v1112_v0, %v1111_v63  ;;  %v2476_v4 = vpop.f32.mrf.mxu1 }
 0x205   : > { %v1118_v15 = vsel %vm339_vm0, %v2476_v4, 0.0 }
 0x206   : > { %v1012_v22 = vpop.f32.mrf.mxu1  ;;  %v1115_v8 = vadd.f32 %v1114_v6, %v1113_v3 }
 0x207   : > { %v1116_v9 = vsel %vm339_vm0, %v1012_v22, 0.0 }
 0x208   : > { %v1117_v11 = vadd.f32 %v1116_v9, %v1115_v8  ;;  %v2479_v12 = vpop.f32.mrf.mxu1 }
 0x209   : > { %v1122_v32 = vsel %vm339_vm0, %v2479_v12, 0.0 }
 0x20a   : > { %v1022_v16 = vpop.f32.mrf.mxu1  ;;  %v1119_v19 = vadd.f32 %v1118_v15, %v1117_v11 }
 0x20b   : > { %v1120_v21 = vsel %vm339_vm0, %v1022_v16, 0.0 }
 0x20c   : > { %v1121_v26 = vadd.f32 %v1120_v21, %v1119_v19  ;;  %v2482_v27 = vpop.f32.mrf.mxu1 }
 0x20d   : > { %v1126_v44 = vsel %vm339_vm0, %v2482_v27, 0.0 }
 0x20e   : > { %v1032_v35 = vpop.f32.mrf.mxu1  ;;  %v1123_v36 = vadd.f32 %v1122_v32, %v1121_v26 }
 0x20f   : > { %v1124_v39 = vsel %vm339_vm0, %v1032_v35, 0.0 }
 0x210   : > { %v1125_v40 = vadd.f32 %v1124_v39, %v1123_v36  ;;  %v2485_v43 = vpop.f32.mrf.mxu1 }
 0x211   : > { %v1130_v55 = vsel %vm339_vm0, %v2485_v43, 0.0 }
 0x212   : > { %v1042_v47 = vpop.f32.mrf.mxu1  ;;  %v1127_v48 = vadd.f32 %v1126_v44, %v1125_v40 }
 0x213   : > { %v1128_v31 = vsel %vm339_vm0, %v1042_v47, 0.0 }
 0x214   : > { %v1129_v51 = vadd.f32 %v1128_v31, %v1127_v48  ;;  %v2488_v52 = vpop.f32.mrf.mxu1 }
 0x215   : > { %v1134_v3 = vsel %vm339_vm0, %v2488_v52, 0.0 }
 0x216   : > { %v1052_v56 = vpop.f32.mrf.mxu1  ;;  %v1131_v59 = vadd.f32 %v1130_v55, %v1129_v51 }
 0x217   : > { %v1132_v60 = vsel %vm339_vm0, %v1052_v56, 0.0 }
 0x218   : > { %v1133_v63 = vadd.f32 %v1132_v60, %v1131_v59  ;;  %v2491_v0 = vpop.f32.mrf.mxu1 }
 0x219   : > { %v1138_v11 = vsel %vm339_vm0, %v2491_v0, 0.0 }
 0x21a   : > { %v1062_v4 = vpop.f32.mrf.mxu1  ;;  %v1135_v6 = vadd.f32 %v1134_v3, %v1133_v63 }
 0x21b   : > { %v1136_v22 = vsel %vm339_vm0, %v1062_v4, 0.0 }
 0x21c   : > { %v1137_v8 = vadd.f32 %v1136_v22, %v1135_v6  ;;  %v2494_v9 = vpop.f32.mrf.mxu1 }
 0x21d   : > { %v1142_v21 = vsel %vm339_vm0, %v2494_v9, 0.0 }
 0x21e   : > { %v1072_v12 = vpop.f32.mrf.mxu1  ;;  %v1139_v15 = vadd.f32 %v1138_v11, %v1137_v8 }
 0x21f   : > { %v1140_v16 = vsel %vm339_vm0, %v1072_v12, 0.0 }
 0x220   : > { %v1141_v19 = vadd.f32 %v1140_v16, %v1139_v15 }
 0x222   : > { %v1143_v26 = vadd.f32 %v1142_v21, %v1141_v19 }
 0x224   : > { %v1144_v27 = vrot.slane %v1143_v26, 4 }
 0x226   : > { %v1145_v32 = vadd.f32 %v1144_v27, %v1143_v26 }
 0x228   : > { %v1146_v35 = vrot.slane %v1145_v32, 2 }
 0x22a   : > { %v1147_v36 = vadd.f32 %v1146_v35, %v1145_v32 }
 0x22c   : > { %v1148_v39 = vrot.slane %v1147_v36, 1 }
 0x22e   : > { %v1149_v40 = vadd.f32 %v1148_v39, %v1147_v36 }
 0x230   : > { %v3100_v43 = vmul.f32 0.0009765625, %v1149_v40 }
 0x232   : > { %v3104_v44 = vsub.f32 %v2902_v33, %v3100_v43  ;;  %v3108_v47 = vsub.f32 %v2905_v34, %v3100_v43  ;;  %v3112_v48 = vsub.f32 %v2912_v37, %v3100_v43  ;;  %v3120_v52 = vsub.f32 %v2915_v38, %v3100_v43 }
 0x233   : > { %v3124_v33 = vsub.f32 %v2922_v41, %v3100_v43  ;;  %v3133_v37 = vsub.f32 %v2925_v42, %v3100_v43  ;;  %v3139_v41 = vsub.f32 %v2932_v45, %v3100_v43  ;;  %v3147_v56 = vsub.f32 %v2935_v46, %v3100_v43 }
 0x234   : > { %v1183_v31 = vmul.f32 %v3104_v44, %v3104_v44  ;;  %v1184_v51 = vmul.f32 %v3108_v47, %v3108_v47  ;;  %v1185_v34 = vmul.f32 %v3112_v48, %v3112_v48  ;;  %v1186_v38 = vmul.f32 %v3120_v52, %v3120_v52 }
 0x235   : > { %v1187_v55 = vmul.f32 %v3124_v33, %v3124_v33  ;;  %v1188_v42 = vmul.f32 %v3133_v37, %v3133_v37  ;;  %v3153_v59 = vsub.f32 %v2942_v49, %v3100_v43  ;;  %v1189_v45 = vmul.f32 %v3139_v41, %v3139_v41 }
 0x236   : > { %2503 = vmatprep.mubr.msk.f32.mxu1 %vm339_vm0, %v1183_v31  ;;  %v3161_v60 = vsub.f32 %v2945_v50, %v3100_v43  ;;  %v1190_v46 = vmul.f32 %v3147_v56, %v3147_v56  ;;  %v3167_v63 = vsub.f32 %v2952_v53, %v3100_v43  ;;  %v3175_v0 = vsub.f32 %v2955_v54, %v3100_v43 }
 0x237   : > { %2504 = vmatmul.mubr.msk.f32.vlgmr.msra.gmra.mxu1 %vm339_vm0, %v1184_v51  ;;  %v1191_v49 = vmul.f32 %v3153_v59, %v3153_v59  ;;  %v3181_v3 = vsub.f32 %v2962_v57, %v3100_v43  ;;  %v3189_v4 = vsub.f32 %v2965_v58, %v3100_v43  ;;  %v3195_v6 = vsub.f32 %v2972_v61, %v3100_v43 }
 0x238   : > { %2506 = vmatprep.mubr.msk.f32.mxu1 %vm339_vm0, %v1185_v34  ;;  %v1192_v50 = vmul.f32 %v3161_v60, %v3161_v60  ;;  %v1193_v53 = vmul.f32 %v3167_v63, %v3167_v63  ;;  %v1194_v54 = vmul.f32 %v3175_v0, %v3175_v0  ;;  %v3203_v22 = vsub.f32 %v2975_v62, %v3100_v43 }
 0x239   : > { %v1195_v57 = vmul.f32 %v3181_v3, %v3181_v3  ;;  %v1196_v58 = vmul.f32 %v3189_v4, %v3189_v4  ;;  %v3209_v8 = vsub.f32 %v2982_v1, %v3100_v43  ;;  %v1197_v61 = vmul.f32 %v3195_v6, %v3195_v6 }
 0x23a   : > { %v3217_v9 = vsub.f32 %v2986_v2, %v3100_v43  ;;  %v1198_v62 = vmul.f32 %v3203_v22, %v3203_v22  ;;  %v3223_v11 = vsub.f32 %v2996_v5, %v3100_v43  ;;  %v3231_v12 = vsub.f32 %v3000_v20, %v3100_v43 }
 0x23b   : > { %2507 = vmatmul.mubr.msk.f32.gmra.mxu1 %vm339_vm0, %v1186_v38  ;;  %v1199_v1 = vmul.f32 %v3209_v8, %v3209_v8  ;;  %v3237_v15 = vsub.f32 %v3009_v7, %v3100_v43  ;;  %v3245_v16 = vsub.f32 %v3012_v24, %v3100_v43  ;;  %v3251_v19 = vsub.f32 %v3019_v30, %v3100_v43 }
 0x23c   : > { %2509 = vmatprep.mubr.msk.f32.mxu1 %vm339_vm0, %v1187_v55  ;;  %v1200_v2 = vmul.f32 %v3217_v9, %v3217_v9  ;;  %v1201_v5 = vmul.f32 %v3223_v11, %v3223_v11  ;;  %v1202_v20 = vmul.f32 %v3231_v12, %v3231_v12  ;;  %v3259_v21 = vsub.f32 %v3022_v10, %v3100_v43 }
 0x23d   : > { %v1203_v7 = vmul.f32 %v3237_v15, %v3237_v15  ;;  %v1204_v24 = vmul.f32 %v3245_v16, %v3245_v16  ;;  %v3265_v26 = vsub.f32 %v3029_v13, %v3100_v43  ;;  %v1205_v30 = vmul.f32 %v3251_v19, %v3251_v19 }
 0x23e   : > { %v3273_v27 = vsub.f32 %v3032_v14, %v3100_v43  ;;  %v1206_v10 = vmul.f32 %v3259_v21, %v3259_v21  ;;  %v3279_v32 = vsub.f32 %v3039_v17, %v3100_v43  ;;  %v3287_v35 = vsub.f32 %v3042_v18, %v3100_v43 }
 0x23f   : > { %2510 = vmatmul.mubr.msk.f32.gmra.mxu1 %vm339_vm0, %v1188_v42  ;;  %v1207_v13 = vmul.f32 %v3265_v26, %v3265_v26  ;;  %v3293_v36 = vsub.f32 %v3049_v23, %v3100_v43  ;;  %v3301_v39 = vsub.f32 %v3052_v25, %v3100_v43  ;;  %v3307_v40 = vsub.f32 %v3059_v28, %v3100_v43 }
 0x240   : > { %2512 = vmatprep.mubr.msk.f32.mxu1 %vm339_vm0, %v1189_v45  ;;  %v1208_v14 = vmul.f32 %v3273_v27, %v3273_v27  ;;  %v1209_v17 = vmul.f32 %v3279_v32, %v3279_v32  ;;  %v1210_v18 = vmul.f32 %v3287_v35, %v3287_v35  ;;  %v3315_v31 = vsub.f32 %v3062_v29, %v3100_v43 }
 0x241   : > { %v1211_v23 = vmul.f32 %v3293_v36, %v3293_v36  ;;  %v1212_v25 = vmul.f32 %v3301_v39, %v3301_v39  ;;  %v1213_v51 = vmul.f32 %v3307_v40, %v3307_v40 }
 0x242   : > { %v1214_v28 = vmul.f32 %v3315_v31, %v3315_v31 }
 0x243   : > { %2513 = vmatmul.mubr.msk.f32.gmra.mxu1 %vm339_vm0, %v1190_v46 }
 0x244   : > { %2515 = vmatprep.mubr.msk.f32.mxu1 %vm339_vm0, %v1191_v49 }
 0x247   : > { %2516 = vmatmul.mubr.msk.f32.gmra.mxu1 %vm339_vm0, %v1192_v50 }
 0x248   : > { %2518 = vmatprep.mubr.msk.f32.mxu1 %vm339_vm0, %v1193_v53 }
 0x24b   : > { %2519 = vmatmul.mubr.msk.f32.gmra.mxu1 %vm339_vm0, %v1194_v54 }
 0x24c   : > { %2521 = vmatprep.mubr.msk.f32.mxu1 %vm339_vm0, %v1195_v57 }
 0x24f   : > { %2522 = vmatmul.mubr.msk.f32.gmra.mxu1 %vm339_vm0, %v1196_v58 }
 0x250   : > { %2524 = vmatprep.mubr.msk.f32.mxu1 %vm339_vm0, %v1197_v61 }
 0x253   : > { %2525 = vmatmul.mubr.msk.f32.gmra.mxu1 %vm339_vm0, %v1198_v62 }
 0x254   : > { %2527 = vmatprep.mubr.msk.f32.mxu1 %vm339_vm0, %v1199_v1 }
 0x257   : > { %2528 = vmatmul.mubr.msk.f32.gmra.mxu1 %vm339_vm0, %v1200_v2 }
 0x258   : > { %2530 = vmatprep.mubr.msk.f32.mxu1 %vm339_vm0, %v1201_v5 }
 0x25b   : > { %2531 = vmatmul.mubr.msk.f32.gmra.mxu1 %vm339_vm0, %v1202_v20 }
 0x25c   : > { %2533 = vmatprep.mubr.msk.f32.mxu1 %vm339_vm0, %v1203_v7 }
 0x25f   : > { %2534 = vmatmul.mubr.msk.f32.gmra.mxu1 %vm339_vm0, %v1204_v24 }
 0x260   : > { %2536 = vmatprep.mubr.msk.f32.mxu1 %vm339_vm0, %v1205_v30 }
 0x263   : > { %2537 = vmatmul.mubr.msk.f32.gmra.mxu1 %vm339_vm0, %v1206_v10 }
 0x264   : > { %2539 = vmatprep.mubr.msk.f32.mxu1 %vm339_vm0, %v1207_v13 }
 0x267   : > { %2540 = vmatmul.mubr.msk.f32.gmra.mxu1 %vm339_vm0, %v1208_v14 }
 0x268   : > { %2542 = vmatprep.mubr.msk.f32.mxu1 %vm339_vm0, %v1209_v17 }
 0x26b   : > { %2543 = vmatmul.mubr.msk.f32.gmra.mxu1 %vm339_vm0, %v1210_v18 }
 0x26c   : > { %2545 = vmatprep.mubr.msk.f32.mxu1 %vm339_vm0, %v1211_v23 }
 0x26f   : > { %2546 = vmatmul.mubr.msk.f32.gmra.mxu1 %vm339_vm0, %v1212_v25 }
 0x270   : > { %2548 = vmatprep.mubr.msk.f32.mxu1 %vm339_vm0, %v1213_v51 }
 0x273   : > { %2549 = vmatmul.mubr.msk.f32.gmra.mxu1 %vm339_vm0, %v1214_v28 }
 0x2f7   : > { %v2505_v34 = vpop.f32.mrf.mxu1 }
 0x2f8   : > { %v1537_v55 = vsel %vm339_vm0, %v2505_v34, 0.0 }
 0x2f9   : > { %v1377_v38 = vpop.f32.mrf.mxu1 }
 0x2fa   : > { %v1536_v29 = vsel %vm339_vm0, %v1377_v38, 0.0 }
 0x2fb   : > { %v2508_v43 = vpop.f32.mrf.mxu1  ;;  %v1538_v42 = vadd.f32 %v1537_v55, %v1536_v29 }
 0x2fc   : > { %v1541_v53 = vsel %vm339_vm0, %v2508_v43, 0.0 }
 0x2fd   : > { %v1387_v45 = vpop.f32.mrf.mxu1 }
 0x2fe   : > { %v1539_v46 = vsel %vm339_vm0, %v1387_v45, 0.0 }
 0x2ff   : > { %v1540_v49 = vadd.f32 %v1539_v46, %v1538_v42  ;;  %v2511_v50 = vpop.f32.mrf.mxu1 }
 0x300   : > { %v1545_v1 = vsel %vm339_vm0, %v2511_v50, 0.0 }
 0x301   : > { %v1397_v54 = vpop.f32.mrf.mxu1  ;;  %v1542_v57 = vadd.f32 %v1541_v53, %v1540_v49 }
 0x302   : > { %v1543_v58 = vsel %vm339_vm0, %v1397_v54, 0.0 }
 0x303   : > { %v1544_v61 = vadd.f32 %v1543_v58, %v1542_v57  ;;  %v2514_v62 = vpop.f32.mrf.mxu1 }
 0x304   : > { %v1549_v30 = vsel %vm339_vm0, %v2514_v62, 0.0 }
 0x305   : > { %v1407_v2 = vpop.f32.mrf.mxu1  ;;  %v1546_v5 = vadd.f32 %v1545_v1, %v1544_v61 }
 0x306   : > { %v1547_v20 = vsel %vm339_vm0, %v1407_v2, 0.0 }
 0x307   : > { %v1548_v7 = vadd.f32 %v1547_v20, %v1546_v5  ;;  %v2517_v24 = vpop.f32.mrf.mxu1 }
 0x308   : > { %v1553_v23 = vsel %vm339_vm0, %v2517_v24, 0.0 }
 0x309   : > { %v1417_v10 = vpop.f32.mrf.mxu1  ;;  %v1550_v13 = vadd.f32 %v1549_v30, %v1548_v7 }
 0x30a   : > { %v1551_v14 = vsel %vm339_vm0, %v1417_v10, 0.0 }
 0x30b   : > { %v1552_v17 = vadd.f32 %v1551_v14, %v1550_v13  ;;  %v2520_v18 = vpop.f32.mrf.mxu1 }
 0x30c   : > { %v1557_v29 = vsel %vm339_vm0, %v2520_v18, 0.0 }
 0x30d   : > { %v1427_v25 = vpop.f32.mrf.mxu1  ;;  %v1554_v51 = vadd.f32 %v1553_v23, %v1552_v17 }
 0x30e   : > { %v1555_v28 = vsel %vm339_vm0, %v1427_v25, 0.0 }
 0x30f   : > { %v1556_v34 = vadd.f32 %v1555_v28, %v1554_v51  ;;  %v2523_v38 = vpop.f32.mrf.mxu1 }
 0x310   : > { %v1561_v49 = vsel %vm339_vm0, %v2523_v38, 0.0 }
 0x311   : > { %v1437_v43 = vpop.f32.mrf.mxu1  ;;  %v1558_v55 = vadd.f32 %v1557_v29, %v1556_v34 }
 0x312   : > { %v1559_v42 = vsel %vm339_vm0, %v1437_v43, 0.0 }
 0x313   : > { %v1560_v45 = vadd.f32 %v1559_v42, %v1558_v55  ;;  %v2526_v46 = vpop.f32.mrf.mxu1 }
 0x314   : > { %v1565_v61 = vsel %vm339_vm0, %v2526_v46, 0.0 }
 0x315   : > { %v1447_v50 = vpop.f32.mrf.mxu1  ;;  %v1562_v53 = vadd.f32 %v1561_v49, %v1560_v45 }
 0x316   : > { %v1563_v54 = vsel %vm339_vm0, %v1447_v50, 0.0 }
 0x317   : > { %v1564_v57 = vadd.f32 %v1563_v54, %v1562_v53  ;;  %v2529_v58 = vpop.f32.mrf.mxu1 }
 0x318   : > { %v1569_v7 = vsel %vm339_vm0, %v2529_v58, 0.0 }
 0x319   : > { %v1457_v62 = vpop.f32.mrf.mxu1  ;;  %v1566_v1 = vadd.f32 %v1565_v61, %v1564_v57 }
 0x31a   : > { %v1567_v2 = vsel %vm339_vm0, %v1457_v62, 0.0 }
 0x31b   : > { %v1568_v5 = vadd.f32 %v1567_v2, %v1566_v1  ;;  %v2532_v20 = vpop.f32.mrf.mxu1 }
 0x31c   : > { %v1573_v17 = vsel %vm339_vm0, %v2532_v20, 0.0 }
 0x31d   : > { %v1467_v24 = vpop.f32.mrf.mxu1  ;;  %v1570_v30 = vadd.f32 %v1569_v7, %v1568_v5 }
 0x31e   : > { %v1571_v10 = vsel %vm339_vm0, %v1467_v24, 0.0 }
 0x31f   : > { %v1572_v13 = vadd.f32 %v1571_v10, %v1570_v30  ;;  %v2535_v14 = vpop.f32.mrf.mxu1 }
 0x320   : > { %v1577_v34 = vsel %vm339_vm0, %v2535_v14, 0.0 }
 0x321   : > { %v1477_v18 = vpop.f32.mrf.mxu1  ;;  %v1574_v23 = vadd.f32 %v1573_v17, %v1572_v13 }
 0x322   : > { %v1575_v25 = vsel %vm339_vm0, %v1477_v18, 0.0 }
 0x323   : > { %v1576_v51 = vadd.f32 %v1575_v25, %v1574_v23  ;;  %v2538_v28 = vpop.f32.mrf.mxu1 }
 0x324   : > { %v1581_v45 = vsel %vm339_vm0, %v2538_v28, 0.0 }
 0x325   : > { %v1487_v38 = vpop.f32.mrf.mxu1  ;;  %v1578_v29 = vadd.f32 %v1577_v34, %v1576_v51 }
 0x326   : > { %v1579_v43 = vsel %vm339_vm0, %v1487_v38, 0.0 }
 0x327   : > { %v1580_v55 = vadd.f32 %v1579_v43, %v1578_v29  ;;  %v2541_v42 = vpop.f32.mrf.mxu1 }
 0x328   : > { %v1585_v57 = vsel %vm339_vm0, %v2541_v42, 0.0 }
 0x329   : > { %v1497_v46 = vpop.f32.mrf.mxu1  ;;  %v1582_v49 = vadd.f32 %v1581_v45, %v1580_v55 }
 0x32a   : > { %v1583_v50 = vsel %vm339_vm0, %v1497_v46, 0.0  ;;  %v1721_v46 = vlaneseq }
 0x32b   : > { %v1584_v53 = vadd.f32 %v1583_v50, %v1582_v49  ;;  %v2544_v54 = vpop.f32.mrf.mxu1  ;;  %v1718_v50 = vld [vmem:[%s325_s13] sm:$0x1] }
 0x32c   : > { %v1589_v5 = vsel %vm339_vm0, %v2544_v54, 0.0  ;;  %v1722_v49 = vshrl.u32 %v1721_v46, 7  ;;  %v3402_v46 = vld [vmem:[%s3763_s4] ss:$0 sm:$0xff] }
 0x32d   : > { %v1507_v58 = vpop.f32.mrf.mxu1  ;;  %v1586_v61 = vadd.f32 %v1585_v57, %v1584_v53  ;;  %v1719_v53 = vadd.f32 1.0, %v1718_v50 }
 0x32e   : > { %v1587_v62 = vsel %vm339_vm0, %v1507_v58, 0.0  ;;  %v1723_v54 = vsub.s32 0, %v1722_v49 }
 0x32f   : > { %v1588_v1 = vadd.f32 %v1587_v62, %v1586_v61  ;;  %v2547_v2 = vpop.f32.mrf.mxu1 }
 0x330   : > { %v1593_v13 = vsel %vm339_vm0, %v2547_v2, 0.0  ;;  %v3362_v58 = vrot.slane %v1719_v53, %v1723_v54 }
 0x331   : > { %v1517_v20 = vpop.f32.mrf.mxu1  ;;  %v1590_v7 = vadd.f32 %v1589_v5, %v1588_v1 }
 0x332   : > { %v1591_v24 = vsel %vm339_vm0, %v1517_v20, 0.0 }
 0x333   : > { %v1592_v30 = vadd.f32 %v1591_v24, %v1590_v7  ;;  %v2550_v10 = vpop.f32.mrf.mxu1 }
 0x334   : > { %v1597_v25 = vsel %vm339_vm0, %v2550_v10, 0.0 }
 0x335   : > { %v1527_v14 = vpop.f32.mrf.mxu1  ;;  %v1594_v17 = vadd.f32 %v1593_v13, %v1592_v30 }
 0x336   : > { %v1595_v18 = vsel %vm339_vm0, %v1527_v14, 0.0 }
 0x337   : > { %v1596_v23 = vadd.f32 %v1595_v18, %v1594_v17 }
 0x339   : > { %v1598_v51 = vadd.f32 %v1597_v25, %v1596_v23 }
 0x33b   : > { %v1599_v28 = vrot.slane %v1598_v51, 4 }
 0x33d   : > { %v1600_v34 = vadd.f32 %v1599_v28, %v1598_v51 }
 0x33f   : > { %v1601_v38 = vrot.slane %v1600_v34, 2 }
 0x341   : > { %v1602_v29 = vadd.f32 %v1601_v38, %v1600_v34 }
 0x343   : > { %v1603_v43 = vrot.slane %v1602_v29, 1 }
 0x345   : > { %v1604_v55 = vadd.f32 %v1603_v43, %v1602_v29 }
 0x347   : > { %v1605_v42 = vmul.f32 0.0009765625, %v1604_v55 }
 0x349   : > { %v1606_v45 = vadd.f32 1e-05, %v1605_v42 }
 0x34b   : > { %2569 = vrsqrt.f32 %v1606_v45 }
 0x358   : > { %v2570_v57 = vpop.eup %2569 }
 0x359   : > { %v1608_v61 = vmul.f32 %v2570_v57, %v3104_v44  ;;  %v1609_v62 = vmul.f32 %v2570_v57, %v3108_v47  ;;  %v1610_v1 = vmul.f32 %v2570_v57, %v3112_v48  ;;  %v1611_v2 = vmul.f32 %v2570_v57, %v3120_v52 }
 0x35a   : > { %v1612_v5 = vmul.f32 %v2570_v57, %v3124_v33  ;;  %v1613_v20 = vmul.f32 %v2570_v57, %v3133_v37  ;;  %v1614_v7 = vmul.f32 %v2570_v57, %v3139_v41  ;;  %v1615_v24 = vmul.f32 %v2570_v57, %v3147_v56 }
 0x35b   : > { %v1616_v30 = vmul.f32 %v2570_v57, %v3153_v59  ;;  %v1617_v10 = vmul.f32 %v2570_v57, %v3161_v60  ;;  %v1618_v44 = vmul.f32 %v2570_v57, %v3167_v63  ;;  %v1619_v47 = vmul.f32 %v2570_v57, %v3175_v0 }
 0x35c   : > { %v1620_v48 = vmul.f32 %v2570_v57, %v3181_v3  ;;  %v1621_v52 = vmul.f32 %v2570_v57, %v3189_v4  ;;  %v1622_v33 = vmul.f32 %v2570_v57, %v3195_v6  ;;  %v1623_v37 = vmul.f32 %v2570_v57, %v3203_v22  ;;  %v2233_v6 = vld [vmem:[%s3762_s3] ss:$0 sm:$0xff] }
 0x35d   : > { %v1624_v41 = vmul.f32 %v2570_v57, %v3209_v8  ;;  %v1625_v56 = vmul.f32 %v2570_v57, %v3217_v9  ;;  %v1626_v59 = vmul.f32 %v2570_v57, %v3223_v11  ;;  %v1627_v60 = vmul.f32 %v2570_v57, %v3231_v12 }
 0x35e   : > { %v1628_v63 = vmul.f32 %v2570_v57, %v3237_v15  ;;  %v1629_v0 = vmul.f32 %v2570_v57, %v3245_v16  ;;  %v1630_v3 = vmul.f32 %v2570_v57, %v3251_v19  ;;  %v1631_v4 = vmul.f32 %v2570_v57, %v3259_v21 }
 0x35f   : > { %v1632_v22 = vmul.f32 %v2570_v57, %v3265_v26  ;;  %v1633_v8 = vmul.f32 %v2570_v57, %v3273_v27  ;;  %v1634_v9 = vmul.f32 %v2570_v57, %v3279_v32  ;;  %v1635_v11 = vmul.f32 %v2570_v57, %v3287_v35 }
 0x360   : > { %v1636_v12 = vmul.f32 %v2570_v57, %v3293_v36  ;;  %v1637_v15 = vmul.f32 %v2570_v57, %v3301_v39  ;;  %v1638_v16 = vmul.f32 %v2570_v57, %v3307_v40  ;;  %v1639_v19 = vmul.f32 %v2570_v57, %v3315_v31 }
 0x361   : > { %v1647_v21 = vmul.f32 %v2233_v6, %v1608_v61  ;;  %v1648_v13 = vmul.f32 %v2233_v6, %v1609_v62  ;;  %v1649_v14 = vmul.f32 %v2233_v6, %v1610_v1  ;;  %v1650_v17 = vmul.f32 %v2233_v6, %v1611_v2 }
 0x362   : > { %v1651_v18 = vmul.f32 %v2233_v6, %v1612_v5  ;;  %v1652_v26 = vmul.f32 %v2233_v6, %v1613_v20  ;;  %v1653_v23 = vmul.f32 %v2233_v6, %v1614_v7  ;;  %v1654_v27 = vmul.f32 %v2233_v6, %v1615_v24 }
 0x363   : > { %v1655_v25 = vmul.f32 %v2233_v6, %v1616_v30  ;;  %v1656_v32 = vmul.f32 %v2233_v6, %v1617_v10  ;;  %v1657_v51 = vmul.f32 %v2233_v6, %v1618_v44  ;;  %v1658_v35 = vmul.f32 %v2233_v6, %v1619_v47 }
 0x364   : > { %v1659_v28 = vmul.f32 %v2233_v6, %v1620_v48  ;;  %v1660_v36 = vmul.f32 %v2233_v6, %v1621_v52  ;;  %v1661_v34 = vmul.f32 %v2233_v6, %v1622_v33  ;;  %v1662_v39 = vmul.f32 %v2233_v6, %v1623_v37 }
 0x365   : > { %v1663_v38 = vmul.f32 %v2233_v6, %v1624_v41  ;;  %v1664_v40 = vmul.f32 %v2233_v6, %v1625_v56  ;;  %v1665_v29 = vmul.f32 %v2233_v6, %v1626_v59  ;;  %v1666_v31 = vmul.f32 %v2233_v6, %v1627_v60 }
 0x366   : > { %v1667_v43 = vmul.f32 %v2233_v6, %v1628_v63  ;;  %v1668_v55 = vmul.f32 %v2233_v6, %v1629_v0  ;;  %v1669_v42 = vmul.f32 %v2233_v6, %v1630_v3  ;;  %v1670_v45 = vmul.f32 %v2233_v6, %v1631_v4  ;;  %v3428_v4 = vld [vmem:[%s328_s21] ss:$0 sm:$0xff] }
 0x367   : > { %v1671_v49 = vmul.f32 %v2233_v6, %v1632_v22  ;;  %v1672_v50 = vmul.f32 %v2233_v6, %v1633_v8  ;;  %v1673_v53 = vmul.f32 %v2233_v6, %v1634_v9  ;;  %v1674_v54 = vmul.f32 %v2233_v6, %v1635_v11 }
 0x368   : > { %v1675_v57 = vmul.f32 %v2233_v6, %v1636_v12  ;;  %v1676_v61 = vmul.f32 %v2233_v6, %v1637_v15  ;;  %v1677_v62 = vmul.f32 %v2233_v6, %v1638_v16  ;;  %v1678_v1 = vmul.f32 %v2233_v6, %v1639_v19 }
 0x369   : > { %v1686_v2 = vadd.f32 %v3402_v46, %v1647_v21  ;;  %v1687_v5 = vadd.f32 %v3402_v46, %v1648_v13  ;;  %v1688_v20 = vadd.f32 %v3402_v46, %v1649_v14  ;;  %v1689_v7 = vadd.f32 %v3402_v46, %v1650_v17 }
 0x36a   : > { %v1690_v24 = vadd.f32 %v3402_v46, %v1651_v18  ;;  %v1691_v30 = vadd.f32 %v3402_v46, %v1652_v26  ;;  %v1692_v10 = vadd.f32 %v3402_v46, %v1653_v23  ;;  %v1693_v44 = vadd.f32 %v3402_v46, %v1654_v27 }
 0x36b   : > { %v1694_v47 = vadd.f32 %v3402_v46, %v1655_v25  ;;  %v1695_v48 = vadd.f32 %v3402_v46, %v1656_v32  ;;  %v1696_v52 = vadd.f32 %v3402_v46, %v1657_v51  ;;  %v1697_v33 = vadd.f32 %v3402_v46, %v1658_v35 }
 0x36c   : > { %v1698_v37 = vadd.f32 %v3402_v46, %v1659_v28  ;;  %v1699_v41 = vadd.f32 %v3402_v46, %v1660_v36  ;;  %v1700_v56 = vadd.f32 %v3402_v46, %v1661_v34  ;;  %v1701_v59 = vadd.f32 %v3402_v46, %v1662_v39 }
 0x36d   : > { %v1702_v60 = vadd.f32 %v3402_v46, %v1663_v38  ;;  %v1726_v63 = vmul.f32 %v3362_v58, %v1686_v2  ;;  %v1727_v0 = vmul.f32 %v3362_v58, %v1687_v5  ;;  %v1728_v3 = vmul.f32 %v3362_v58, %v1688_v20 }
 0x36e   : > { %v1703_v6 = vadd.f32 %v3402_v46, %v1664_v40  ;;  %v1704_v22 = vadd.f32 %v3402_v46, %v1665_v29  ;;  %v1705_v8 = vadd.f32 %v3402_v46, %v1666_v31  ;;  %v1729_v9 = vmul.f32 %v3362_v58, %v1689_v7 }
 0x36f   : > { %v3435_v11 = vadd.f32 %v3402_v46, %v1667_v43  ;;  %v3438_v12 = vadd.f32 %v3402_v46, %v1668_v55  ;;  %v3441_v15 = vadd.f32 %v3402_v46, %v1669_v42  ;;  %v1730_v16 = vmul.f32 %v3362_v58, %v1690_v24 }
 0x370   : > { %v3445_v19 = vadd.f32 %v3402_v46, %v1670_v45  ;;  %v3448_v21 = vadd.f32 %v3402_v46, %v1671_v49  ;;  %v3451_v13 = vadd.f32 %v3402_v46, %v1672_v50  ;;  %v1731_v14 = vmul.f32 %v3362_v58, %v1691_v30 }
 0x371   : > { %v1732_v17 = vmul.f32 %v3362_v58, %v1692_v10  ;;  %v3456_v18 = vadd.f32 %v3428_v4, %v1726_v63  ;;  %v3459_v26 = vadd.f32 %v3428_v4, %v1727_v0  ;;  %v3462_v23 = vadd.f32 %v3428_v4, %v1728_v3 }
 0x372   : > { %v3465_v27 = vadd.f32 %v3402_v46, %v1673_v53  ;;  %v3468_v25 = vadd.f32 %v3402_v46, %v1674_v54  ;;  %v1733_v32 = vmul.f32 %v3362_v58, %v1693_v44  ;;  %v3472_v51 = vadd.f32 %v3428_v4, %v1729_v9 }
 0x373   : > { %v3475_v35 = vadd.f32 %v3402_v46, %v1675_v57  ;;  %v3478_v28 = vadd.f32 %v3402_v46, %v1676_v61  ;;  %v1734_v36 = vmul.f32 %v3362_v58, %v1694_v47  ;;  %v3482_v34 = vadd.f32 %v3428_v4, %v1730_v16 }
 0x374   : > { %v3485_v39 = vadd.f32 %v3402_v46, %v1677_v62  ;;  %v1735_v38 = vmul.f32 %v3362_v58, %v1695_v48  ;;  %v1736_v40 = vmul.f32 %v3362_v58, %v1696_v52  ;;  %v3490_v29 = vadd.f32 %v3428_v4, %v1731_v14 }
 0x375   : > { %v3493_v31 = vadd.f32 %v3428_v4, %v1732_v17  ;;  %v2236_v43 = vmul.f32 -1.442695, %v3456_v18  ;;  %v2237_v55 = vmul.f32 -1.442695, %v3459_v26  ;;  %v2238_v42 = vmul.f32 -1.442695, %v3462_v23 }
 0x376   : > { %v3499_v45 = vadd.f32 %v3402_v46, %v1678_v1  ;;  %v1737_v49 = vmul.f32 %v3362_v58, %v1697_v33  ;;  %v3503_v50 = vadd.f32 %v3428_v4, %v1733_v32  ;;  %v2239_v53 = vmul.f32 -1.442695, %v3472_v51 }
 0x377   : > { %v1738_v54 = vmul.f32 %v3362_v58, %v1698_v37  ;;  %v3508_v57 = vadd.f32 %v3428_v4, %v1734_v36  ;;  %2571 = vpow2.f32 %v2236_v43  ;;  %v2240_v61 = vmul.f32 -1.442695, %v3482_v34 }
 0x378   : > { %v1739_v62 = vmul.f32 %v3362_v58, %v1699_v41  ;;  %v3513_v46 = vadd.f32 %v3428_v4, %v1735_v38  ;;  %2573 = vpow2.f32 %v2237_v55  ;;  %v2241_v1 = vmul.f32 -1.442695, %v3490_v29 }
 0x379   : > { %v1740_v2 = vmul.f32 %v3362_v58, %v1700_v56  ;;  %v3518_v5 = vadd.f32 %v3428_v4, %v1736_v40  ;;  %2575 = vpow2.f32 %v2238_v42  ;;  %v2242_v20 = vmul.f32 -1.442695, %v3493_v31 }
 0x37a   : > { %v1741_v7 = vmul.f32 %v3362_v58, %v1701_v59  ;;  %v3523_v24 = vadd.f32 %v3428_v4, %v1737_v49  ;;  %2577 = vpow2.f32 %v2239_v53  ;;  %v2243_v30 = vmul.f32 -1.442695, %v3503_v50 }
 0x37b   : > { %v1742_v10 = vmul.f32 %v3362_v58, %v1702_v60  ;;  %v3528_v44 = vadd.f32 %v3428_v4, %v1738_v54  ;;  %2579 = vpow2.f32 %v2240_v61  ;;  %v2244_v47 = vmul.f32 -1.442695, %v3508_v57 }
 0x37c   : > { %v1743_v48 = vmul.f32 %v3362_v58, %v1703_v6  ;;  %v3533_v52 = vadd.f32 %v3428_v4, %v1739_v62  ;;  %2581 = vpow2.f32 %v2241_v1  ;;  %v2245_v33 = vmul.f32 -1.442695, %v3513_v46 }
 0x37d   : > { %v1744_v37 = vmul.f32 %v3362_v58, %v1704_v22  ;;  %v3538_v41 = vadd.f32 %v3428_v4, %v1740_v2  ;;  %2583 = vpow2.f32 %v2242_v20  ;;  %v2246_v56 = vmul.f32 -1.442695, %v3518_v5 }
 0x37e   : > { %v1745_v59 = vmul.f32 %v3362_v58, %v1705_v8  ;;  %v3543_v60 = vadd.f32 %v3428_v4, %v1741_v7  ;;  %2585 = vpow2.f32 %v2243_v30  ;;  %v2247_v63 = vmul.f32 -1.442695, %v3523_v24 }
 0x37f   : > { %v1746_v0 = vmul.f32 %v3362_v58, %v3435_v11  ;;  %v3549_v3 = vadd.f32 %v3428_v4, %v1742_v10  ;;  %2587 = vpow2.f32 %v2244_v47  ;;  %v2248_v6 = vmul.f32 -1.442695, %v3528_v44 }
 0x380   : > { %v1747_v22 = vmul.f32 %v3362_v58, %v3438_v12  ;;  %v3555_v8 = vadd.f32 %v3428_v4, %v1743_v48  ;;  %2589 = vpow2.f32 %v2245_v33  ;;  %v2249_v9 = vmul.f32 -1.442695, %v3533_v52 }
 0x381   : > { %v1748_v16 = vmul.f32 %v3362_v58, %v3441_v15  ;;  %v3561_v11 = vadd.f32 %v3428_v4, %v1744_v37  ;;  %2591 = vpow2.f32 %v2246_v56  ;;  %v2250_v14 = vmul.f32 -1.442695, %v3538_v41 }
 0x382   : > { %v1749_v17 = vmul.f32 %v3362_v58, %v3445_v19  ;;  %v3567_v12 = vadd.f32 %v3428_v4, %v1745_v59  ;;  %2593 = vpow2.f32 %v2247_v63  ;;  %v2251_v32 = vmul.f32 -1.442695, %v3543_v60 }
 0x383   : > { %v1750_v36 = vmul.f32 %v3362_v58, %v3448_v21  ;;  %v3573_v15 = vadd.f32 %v3428_v4, %v1746_v0  ;;  %2595 = vpow2.f32 %v2248_v6  ;;  %v2252_v38 = vmul.f32 -1.442695, %v3549_v3 }
 0x384   : > { %v3576_v40 = vpop.eup %2571  ;;  %v1751_v19 = vmul.f32 %v3362_v58, %v3451_v13  ;;  %v3581_v43 = vadd.f32 %v3428_v4, %v1747_v22  ;;  %2597 = vpow2.f32 %v2249_v9  ;;  %v2253_v55 = vmul.f32 -1.442695, %v3555_v8 }
 0x385   : > { %v2574_v42 = vpop.eup %2573  ;;  %v1752_v21 = vmul.f32 %v3362_v58, %v3465_v27  ;;  %v3587_v49 = vadd.f32 %v3428_v4, %v1748_v16  ;;  %2599 = vpow2.f32 %v2250_v14  ;;  %v2254_v53 = vmul.f32 -1.442695, %v3561_v11 }
 0x386   : > { %v2576_v54 = vpop.eup %2575  ;;  %v1753_v13 = vmul.f32 %v3362_v58, %v3468_v25  ;;  %v3593_v61 = vadd.f32 %v3428_v4, %v1749_v17  ;;  %2601 = vpow2.f32 %v2251_v32  ;;  %v2255_v62 = vmul.f32 -1.442695, %v3567_v12 }
 0x387   : > { %v2578_v1 = vpop.eup %2577  ;;  %v1754_v27 = vmul.f32 %v3362_v58, %v3475_v35  ;;  %v3599_v2 = vadd.f32 %v3428_v4, %v1750_v36  ;;  %2603 = vpow2.f32 %v2252_v38  ;;  %v2256_v20 = vmul.f32 -1.442695, %v3573_v15 }
 0x388   : > { %v2580_v7 = vpop.eup %2579  ;;  %v1755_v25 = vmul.f32 %v3362_v58, %v3478_v28  ;;  %v3605_v30 = vadd.f32 %v3428_v4, %v1751_v19  ;;  %2605 = vpow2.f32 %v2253_v55  ;;  %v2257_v10 = vmul.f32 -1.442695, %v3581_v43 }
 0x389   : > { %v2582_v47 = vpop.eup %2581  ;;  %v1756_v35 = vmul.f32 %v3362_v58, %v3485_v39  ;;  %v3611_v48 = vadd.f32 %v3428_v4, %v1752_v21  ;;  %2607 = vpow2.f32 %v2254_v53  ;;  %v2258_v33 = vmul.f32 -1.442695, %v3587_v49 }
 0x38a   : > { %v2584_v37 = vpop.eup %2583  ;;  %v1757_v28 = vmul.f32 %v3362_v58, %v3499_v45  ;;  %v3617_v56 = vadd.f32 %v3428_v4, %v1753_v13  ;;  %2609 = vpow2.f32 %v2255_v62  ;;  %v2259_v59 = vmul.f32 -1.442695, %v3593_v61 }
 0x38b   : > { %v2586_v63 = vpop.eup %2585  ;;  %v3621_v0 = vadd.f32 %v3428_v4, %v1754_v27  ;;  %2611 = vpow2.f32 %v2256_v20  ;;  %v2260_v39 = vmul.f32 -1.442695, %v3599_v2  ;;  %v3625_v22 = vadd.f32 %v3428_v4, %v1755_v25 }
 0x38c   : > { %v2588_v6 = vpop.eup %2587  ;;  %2613 = vpow2.f32 %v2257_v10  ;;  %v2261_v58 = vmul.f32 -1.442695, %v3605_v30  ;;  %v3629_v9 = vadd.f32 %v3428_v4, %v1756_v35  ;;  %v2262_v16 = vmul.f32 -1.442695, %v3611_v48 }
 0x38d   : > { %v2590_v45 = vpop.eup %2589  ;;  %2615 = vpow2.f32 %v2258_v33  ;;  %v3633_v17 = vadd.f32 %v3428_v4, %v1757_v28  ;;  %v2263_v32 = vmul.f32 -1.442695, %v3617_v56  ;;  %v2264_v38 = vmul.f32 -1.442695, %v3621_v0 }
 0x38e   : > { %v2592_v14 = vpop.eup %2591  ;;  %2617 = vpow2.f32 %v2259_v59  ;;  %v2265_v55 = vmul.f32 -1.442695, %v3625_v22  ;;  %v2266_v53 = vmul.f32 -1.442695, %v3629_v9  ;;  %v1893_v27 = vadd.f32 1.0, %v3576_v40 }
 0x38f   : > { %3769 = vst [vmem:[#allocation2_spill] sm:$0xff] %v3633_v17  ;;  %v2594_v36 = vpop.eup %2593  ;;  %2619 = vpow2.f32 %v2260_v39  ;;  %v2267_v4 = vmul.f32 -1.442695, %v3633_v17  ;;  %v1894_v25 = vadd.f32 1.0, %v2574_v42  ;;  %v1895_v35 = vadd.f32 1.0, %v2576_v54 }
 0x390   : > { %v2596_v19 = vpop.eup %2595  ;;  %2621 = vpow2.f32 %v2261_v58  ;;  %v1896_v28 = vadd.f32 1.0, %v2578_v1  ;;  %v1897_v39 = vadd.f32 1.0, %v2580_v7  ;;  %v1899_v17 = vadd.f32 1.0, %v2584_v37 }
 0x391   : > { %v2598_v21 = vpop.eup %2597  ;;  %2623 = vpow2.f32 %v2262_v16  ;;  %v1898_v16 = vadd.f32 1.0, %v2582_v47  ;;  %v1900_v40 = vadd.f32 1.0, %v2586_v63  ;;  %v1901_v42 = vadd.f32 1.0, %v2588_v6 }
 0x392   : > { %v2600_v13 = vpop.eup %2599  ;;  %2625 = vpow2.f32 %v2263_v32  ;;  %v1902_v54 = vadd.f32 1.0, %v2590_v45  ;;  %v1903_v1 = vadd.f32 1.0, %v2592_v14  ;;  %v1906_v63 = vadd.f32 1.0, %v2598_v21 }
 0x393   : > { %v2602_v62 = vpop.eup %2601  ;;  %2627 = vpow2.f32 %v2264_v38  ;;  %v1907_v6 = vadd.f32 1.0, %v2600_v13 }
 0x394   : > { %v2604_v20 = vpop.eup %2603  ;;  %2629 = vpow2.f32 %v2265_v55 }
 0x395   : > { %v2606_v10 = vpop.eup %2605  ;;  %2631 = vpow2.f32 %v2266_v53 }
 0x396   : > { %v2608_v33 = vpop.eup %2607  ;;  %2633 = vpow2.f32 %v2267_v4 }
 0x397   : > { %v2610_v59 = vpop.eup %2609  ;;  %2635 = vrcp.f32 %v1893_v27  ;;  %v1904_v27 = vadd.f32 1.0, %v2594_v36  ;;  %v1911_v13 = vadd.f32 1.0, %v2608_v33 }
 0x398   : > { %v2612_v58 = vpop.eup %2611  ;;  %2637 = vrcp.f32 %v1894_v25  ;;  %v1905_v25 = vadd.f32 1.0, %v2596_v19  ;;  %v1910_v19 = vadd.f32 1.0, %v2606_v10 }
 0x399   : > { %v2614_v32 = vpop.eup %2613  ;;  %2639 = vrcp.f32 %v1895_v35 }
 0x39a   : > { %v2616_v38 = vpop.eup %2615  ;;  %2641 = vrcp.f32 %v1896_v28  ;;  %v1908_v28 = vadd.f32 1.0, %v2602_v62  ;;  %v1914_v33 = vadd.f32 1.0, %v2614_v32 }
 0x39b   : > { %v2618_v55 = vpop.eup %2617  ;;  %2643 = vrcp.f32 %v1897_v39 }
 0x39c   : > { %v2620_v53 = vpop.eup %2619  ;;  %2645 = vrcp.f32 %v1898_v16  ;;  %v1912_v16 = vadd.f32 1.0, %v2610_v59  ;;  %v1915_v59 = vadd.f32 1.0, %v2616_v38 }
 0x39d   : > { %v2622_v4 = vpop.eup %2621  ;;  %2647 = vrcp.f32 %v1899_v17  ;;  %v1909_v17 = vadd.f32 1.0, %v2604_v20  ;;  %v1917_v32 = vadd.f32 1.0, %v2620_v53 }
 0x39e   : > { %v2624_v7 = vpop.eup %2623  ;;  %2649 = vrcp.f32 %v1900_v40  ;;  %v1918_v38 = vadd.f32 1.0, %v2622_v4 }
 0x39f   : > { %v2626_v47 = vpop.eup %2625  ;;  %2651 = vrcp.f32 %v1901_v42  ;;  %v1913_v42 = vadd.f32 1.0, %v2612_v58  ;;  %v1916_v58 = vadd.f32 1.0, %v2618_v55  ;;  %v1919_v55 = vadd.f32 1.0, %v2624_v7 }
 0x3a0   : > { %v3641_v37 = vpop.eup %2627  ;;  %2653 = vrcp.f32 %v1902_v54  ;;  %v1920_v53 = vadd.f32 1.0, %v2626_v47 }
 0x3a1   : > { %v3643_v35 = vpop.eup %2629  ;;  %2655 = vrcp.f32 %v1903_v1  ;;  %v1921_v4 = vadd.f32 1.0, %v3641_v37 }
 0x3a2   : > { %v3645_v45 = vpop.eup %2631  ;;  %2657 = vrcp.f32 %v1904_v27 }
 0x3a3   : > { %v3647_v14 = vpop.eup %2633  ;;  %2659 = vrcp.f32 %v1905_v25 }
 0x3a4   : > { %v2636_v36 = vpop.eup %2635  ;;  %2661 = vrcp.f32 %v1906_v63 }
 0x3a5   : > { %v2638_v21 = vpop.eup %2637  ;;  %2663 = vrcp.f32 %v1907_v6  ;;  %v1989_v62 = vmul.f32 %v2636_v36, %v3456_v18  ;;  %v1923_v36 = vadd.f32 1.0, %v3645_v45 }
 0x3a6   : > { %v2640_v39 = vpop.eup %2639  ;;  %2665 = vrcp.f32 %v1908_v28  ;;  %v1990_v20 = vmul.f32 %v2638_v21, %v3459_v26 }
 0x3a7   : > { %v2642_v40 = vpop.eup %2641  ;;  %2667 = vrcp.f32 %v1909_v17  ;;  %v1991_v54 = vmul.f32 %v2640_v39, %v3462_v23  ;;  %2021 = vst.msk [vmem:[%s3654_s24] sm:$0xff] %vm339_vm0, %v1989_v62  ;;  %v1922_v17 = vadd.f32 1.0, %v3643_v35 }
 0x3a8   : > { %v2644_v10 = vpop.eup %2643  ;;  %2669 = vrcp.f32 %v1910_v19  ;;  %v1992_v1 = vmul.f32 %v2642_v40, %v3472_v51  ;;  %2022 = vst.msk [vmem:[%s3654_s24 + $0x8] sm:$0xff] %vm339_vm0, %v1990_v20  ;;  %v1924_v19 = vadd.f32 1.0, %v3647_v14 }
 0x3a9   : > { %v2646_v18 = vpop.eup %2645  ;;  %2671 = vrcp.f32 %v1911_v13  ;;  %v1993_v26 = vmul.f32 %v2644_v10, %v3482_v34  ;;  %2023 = vst.msk [vmem:[%s3654_s24 + $0x10] sm:$0xff] %vm339_vm0, %v1991_v54 }
 0x3aa   : > { %v2648_v23 = vpop.eup %2647  ;;  %2673 = vrcp.f32 %v1912_v16  ;;  %v1994_v27 = vmul.f32 %v2646_v18, %v3490_v29  ;;  %2024 = vst.msk [vmem:[%s3654_s24 + $0x18] sm:$0xff] %vm339_vm0, %v1992_v1 }
 0x3ab   : > { %v2650_v51 = vpop.eup %2649  ;;  %2675 = vrcp.f32 %v1913_v42  ;;  %v1995_v25 = vmul.f32 %v2648_v23, %v3493_v31  ;;  %2025 = vst.msk [vmem:[%s3654_s24 + $0x20] sm:$0xff] %vm339_vm0, %v1993_v26 }
 0x3ac   : > { %v2652_v34 = vpop.eup %2651  ;;  %2677 = vrcp.f32 %v1914_v33  ;;  %v1996_v63 = vmul.f32 %v2650_v51, %v3503_v50  ;;  %2026 = vst.msk [vmem:[%s3654_s24 + $0x28] sm:$0xff] %vm339_vm0, %v1994_v27 }
 0x3ad   : > { %v2654_v29 = vpop.eup %2653  ;;  %2679 = vrcp.f32 %v1915_v59  ;;  %v1997_v6 = vmul.f32 %v2652_v34, %v3508_v57  ;;  %2027 = vst.msk [vmem:[%s3654_s24 + $0x30] sm:$0xff] %vm339_vm0, %v1995_v25 }
 0x3ae   : > { %v2656_v31 = vpop.eup %2655  ;;  %2681 = vrcp.f32 %v1916_v58  ;;  %v1998_v28 = vmul.f32 %v2654_v29, %v3513_v46  ;;  %2028 = vst.msk [vmem:[%s3654_s24 + $0x38] sm:$0xff] %vm339_vm0, %v1996_v63  ;;  %v3770_v58 = vld [vmem:[#allocation2_spill] sm:$0xff] }
 0x3af   : > { %v2658_v50 = vpop.eup %2657  ;;  %2683 = vrcp.f32 %v1917_v32  ;;  %v1999_v7 = vmul.f32 %v2656_v31, %v3518_v5  ;;  %2029 = vst.msk [vmem:[%s3654_s24 + $0x40] sm:$0xff] %vm339_vm0, %v1997_v6 }
 0x3b0   : > { %v2660_v57 = vpop.eup %2659  ;;  %2685 = vrcp.f32 %v1918_v38  ;;  %v2000_v47 = vmul.f32 %v2658_v50, %v3523_v24  ;;  %2030 = vst.msk [vmem:[%s3654_s24 + $0x48] sm:$0xff] %vm339_vm0, %v1998_v28 }
 0x3b1   : > { %v2662_v46 = vpop.eup %2661  ;;  %2687 = vrcp.f32 %v1919_v55  ;;  %v2001_v37 = vmul.f32 %v2660_v57, %v3528_v44  ;;  %2031 = vst.msk [vmem:[%s3654_s24 + $0x50] sm:$0xff] %vm339_vm0, %v1999_v7 }
 0x3b2   : > { %v2664_v5 = vpop.eup %2663  ;;  %2689 = vrcp.f32 %v1920_v53  ;;  %v2002_v35 = vmul.f32 %v2662_v46, %v3533_v52  ;;  %2032 = vst.msk [vmem:[%s3654_s24 + $0x58] sm:$0xff] %vm339_vm0, %v2000_v47 }
 0x3b3   : > { %v2666_v24 = vpop.eup %2665  ;;  %2691 = vrcp.f32 %v1921_v4  ;;  %v2003_v45 = vmul.f32 %v2664_v5, %v3538_v41  ;;  %2033 = vst.msk [vmem:[%s3654_s24 + $0x60] sm:$0xff] %vm339_vm0, %v2001_v37 }
 0x3b4   : > { %v2668_v44 = vpop.eup %2667  ;;  %2693 = vrcp.f32 %v1922_v17  ;;  %v2004_v21 = vmul.f32 %v2666_v24, %v3543_v60  ;;  %2034 = vst.msk [vmem:[%s3654_s24 + $0x68] sm:$0xff] %vm339_vm0, %v2002_v35 }
 0x3b5   : > { %v2670_v14 = vpop.eup %2669  ;;  %2695 = vrcp.f32 %v1923_v36  ;;  %v2005_v52 = vmul.f32 %v2668_v44, %v3549_v3  ;;  %2035 = vst.msk [vmem:[%s3654_s24 + $0x70] sm:$0xff] %vm339_vm0, %v2003_v45 }
 0x3b6   : > { %v2672_v13 = vpop.eup %2671  ;;  %2697 = vrcp.f32 %v1924_v19  ;;  %v2006_v41 = vmul.f32 %v2670_v14, %v3555_v8  ;;  %2036 = vst.msk [vmem:[%s3654_s24 + $0x78] sm:$0xff] %vm339_vm0, %v2004_v21 }
 0x3b7   : > { %v2674_v62 = vpop.eup %2673  ;;  %v2007_v60 = vmul.f32 %v2672_v13, %v3561_v11  ;;  %2037 = vst.msk [vmem:[%s3654_s24 + $0x80] sm:$0xff] %vm339_vm0, %v2005_v52 }
 0x3b8   : > { %v2676_v39 = vpop.eup %2675  ;;  %v2008_v16 = vmul.f32 %v2674_v62, %v3567_v12  ;;  %2038 = vst.msk [vmem:[%s3654_s24 + $0x88] sm:$0xff] %vm339_vm0, %v2006_v41 }
 0x3b9   : > { %v2678_v3 = vpop.eup %2677  ;;  %v2009_v20 = vmul.f32 %v2676_v39, %v3573_v15  ;;  %2039 = vst.msk [vmem:[%s3654_s24 + $0x90] sm:$0xff] %vm339_vm0, %v2007_v60 }
 0x3ba   : > { %v2680_v8 = vpop.eup %2679  ;;  %v2010_v40 = vmul.f32 %v2678_v3, %v3581_v43  ;;  %2040 = vst.msk [vmem:[%s3654_s24 + $0x98] sm:$0xff] %vm339_vm0, %v2008_v16 }
 0x3bb   : > { %v2682_v11 = vpop.eup %2681  ;;  %v2011_v42 = vmul.f32 %v2680_v8, %v3587_v49  ;;  %2041 = vst.msk [vmem:[%s3654_s24 + $0xa0] sm:$0xff] %vm339_vm0, %v2009_v20 }
 0x3bc   : > { %v2684_v12 = vpop.eup %2683  ;;  %v2012_v54 = vmul.f32 %v2682_v11, %v3593_v61  ;;  %2042 = vst.msk [vmem:[%s3654_s24 + $0xa8] sm:$0xff] %vm339_vm0, %v2010_v40 }
 0x3bd   : > { %v2686_v15 = vpop.eup %2685  ;;  %v2013_v10 = vmul.f32 %v2684_v12, %v3599_v2  ;;  %2043 = vst.msk [vmem:[%s3654_s24 + $0xb0] sm:$0xff] %vm339_vm0, %v2011_v42 }
 0x3be   : > { %v2688_v43 = vpop.eup %2687  ;;  %v2014_v33 = vmul.f32 %v2686_v15, %v3605_v30  ;;  %2044 = vst.msk [vmem:[%s3654_s24 + $0xb8] sm:$0xff] %vm339_vm0, %v2012_v54 }
 0x3bf   : > { %v2690_v49 = vpop.eup %2689  ;;  %v2015_v1 = vmul.f32 %v2688_v43, %v3611_v48  ;;  %2045 = vst.msk [vmem:[%s3654_s24 + $0xc0] sm:$0xff] %vm339_vm0, %v2013_v10 }
 0x3c0   : > { %v2692_v61 = vpop.eup %2691  ;;  %v2016_v2 = vmul.f32 %v2690_v49, %v3617_v56  ;;  %2046 = vst.msk [vmem:[%s3654_s24 + $0xc8] sm:$0xff] %vm339_vm0, %v2014_v33 }
 0x3c1   : > { %v2694_v18 = vpop.eup %2693  ;;  %v2017_v59 = vmul.f32 %v2692_v61, %v3621_v0  ;;  %2047 = vst.msk [vmem:[%s3654_s24 + $0xd0] sm:$0xff] %vm339_vm0, %v2015_v1 }
 0x3c2   : > { %v2696_v30 = vpop.eup %2695  ;;  %v2018_v26 = vmul.f32 %v2694_v18, %v3625_v22  ;;  %2048 = vst.msk [vmem:[%s3654_s24 + $0xd8] sm:$0xff] %vm339_vm0, %v2016_v2 }
 0x3c3   : > { %v2698_v48 = vpop.eup %2697  ;;  %v2019_v23 = vmul.f32 %v2696_v30, %v3629_v9  ;;  %2049 = vst.msk [vmem:[%s3654_s24 + $0xe0] sm:$0xff] %vm339_vm0, %v2017_v59 }
 0x3c4   : > { %v2020_v27 = vmul.f32 %v2698_v48, %v3770_v58  ;;  %2050 = vst.msk [vmem:[%s3654_s24 + $0xe8] sm:$0xff] %vm339_vm0, %v2018_v26 }
 0x3c5   : > { %2051 = vst.msk [vmem:[%s3654_s24 + $0xf0] sm:$0xff] %vm339_vm0, %v2019_v23 }
 0x3c6   : > { %2052 = vst.msk [vmem:[%s3654_s24 + $0xf8] sm:$0xff] %vm339_vm0, %v2020_v27 }
 0x3c7 PF: > { %s18_s27 = sadd.s32 1, %s2705_s27  }
 0x3c8   : > { %p15_p4 = scmp.ge.s32.totalorder %s18_s27, 4  }
 0x3ca   :  { %17 = sbr.rel (!%p15_p4) target bundleno = 1 (0x1), region = 88 }

</bundles_post_ra>
